<compile_context>
chip_gen: v6e
topology: v6e:2x2x1
jax: 0.10.0
libtpu: 0.0.40
codegen_flags: <defaults>
</compile_context>

<pallas_src>
import functools

import jax
import jax.numpy as jnp
import numpy as np
from jax.experimental import pallas as pl
from jax.experimental.pallas import tpu as pltpu

N_SHELLS = 3
HIDDEN = 24
_LANE = 128


@functools.lru_cache(maxsize=None)
def _vmem_capacity_bytes():
    """Best-effort physical-VMEM query (falls back to 128 MiB parts)."""
    try:
        return int(pltpu.get_tpu_info().vmem_capacity_bytes)
    except Exception:
        return 128 << 20


def fold_attention_params(w1, b1, w2, b2, length):
    """One-time parameter preprocessing (hoisted out of the forward pass).

    Folds the per-channel mean over the last (length-L) axis into the first
    Linear:  mean(x, -1).reshape(B, 3C) @ W1 == x.reshape(B, 3*C*L) @ W1_fold.
    """
    w1_fold = jnp.repeat(w1, length, axis=0) / float(length)      # (3*C*L, 24)
    return w1_fold, b1.reshape(1, -1), w2, b2.reshape(1, -1)


def shell_attention_kernel(x0_ref, x1_ref, x2_ref,
                           w1f_ref, b1_ref, w2_ref, b2_ref, o_ref):
    """One batch tile of ShellAttention.

    x*_ref : (bm, CLP)           flattened (possibly lane-padded) shells
    w1f_ref: (3*CLP, HIDDEN)     first Linear with the per-channel mean folded in
    b1_ref : (1, HIDDEN)
    w2_ref : (HIDDEN, 3)
    b2_ref : (1, 3)
    o_ref  : (bm, 3*CLP)         scaled shells, concatenated along channels
    """
    cl = x0_ref.shape[-1]
    dot = functools.partial(jnp.dot, preferred_element_type=jnp.float32,
                            precision=jax.lax.Precision.HIGHEST)

    # 1)+2) fused: per-channel means -> Linear(48,24)  (mean(x)@W1 == x2d@W1_fold)
    h = (dot(x0_ref[...], w1f_ref[0 * cl:1 * cl, :])
         + dot(x1_ref[...], w1f_ref[1 * cl:2 * cl, :])
         + dot(x2_ref[...], w1f_ref[2 * cl:3 * cl, :])
         + b1_ref[...])                                            # (bm, 24)
    h = jnp.where(h > 0, h, 0.1 * h)                               # LeakyReLU(0.1)

    logits = dot(h, w2_ref[...]) + b2_ref[...]                     # (bm, 3)
    logits = logits - jnp.max(logits, axis=-1, keepdims=True)
    p = jnp.exp(logits)
    w = p * pl.reciprocal(jnp.sum(p, axis=-1, keepdims=True), approx=False)

    # 3) scale each shell by its scalar weight (re-read x: short live range).
    o_ref[:, 0 * cl:1 * cl] = (x0_ref[...] * w[:, 0:1]).astype(o_ref.dtype)
    o_ref[:, 1 * cl:2 * cl] = (x1_ref[...] * w[:, 1:2]).astype(o_ref.dtype)
    o_ref[:, 2 * cl:3 * cl] = (x2_ref[...] * w[:, 2:3]).astype(o_ref.dtype)


@functools.partial(jax.jit, static_argnames=("block_b",))
def shell_attention(shells, w1_fold, b1, w2, b2, *, block_b=None):
    """shells: tuple of 3 arrays, each (B, C, L). Returns (B, 3C, L)."""
    s0, s1, s2 = shells
    B, C, L = s0.shape
    CL = C * L
    itemsize = jnp.dtype(s0.dtype).itemsize

    # Lane-density guard: keep the per-shell flattened width a multiple of 128
    # so every store is a wide unmasked vst (zero-pad otherwise; the pad
    # columns are zero so the folded mean is unaffected, and they are sliced
    # off again below).  For the common aligned case this is all a no-op.
    pad = (-CL) % _LANE
    CLP = CL + pad

    def flat(s):
        x = s.reshape(B, CL)
        if pad:
            x = jnp.pad(x, ((0, 0), (0, pad)))
        return x

    x0, x1, x2 = flat(s0), flat(s1), flat(s2)

    w1f = w1_fold
    if pad:
        w1f = jnp.pad(w1_fold.reshape(N_SHELLS, CL, HIDDEN),
                      ((0, 0), (0, pad), (0, 0))).reshape(N_SHELLS * CLP, HIDDEN)

    # ---- Generation-aware batch-tile / VMEM sizing -------------------------
    vmem_cap = _vmem_capacity_bytes()
    small_vmem = vmem_cap <= (64 << 20)                 # v7x-class parts
    io_target = (12 << 20) if small_vmem else (20 << 20)   # single-buffered I/O
    vmem_cap_limit = (48 << 20) if small_vmem else (100 << 20)

    bytes_per_row = 2 * N_SHELLS * CLP * itemsize       # 1 read + 1 write / elem
    weight_bytes = (N_SHELLS * CLP * HIDDEN + HIDDEN
                    + HIDDEN * N_SHELLS + N_SHELLS) * itemsize
    headroom = 8 << 20

    # Largest tile whose double-buffered I/O (+ weights + headroom) fits the cap.
    max_io = max(bytes_per_row,
                 (vmem_cap_limit - 2 * weight_bytes - headroom) // 2)
    if block_b is None:
        bm = max(1, min(io_target, max_io) // bytes_per_row)
    else:
        bm = max(1, min(int(block_b), max_io // bytes_per_row))
    bm = min(int(bm), B)
    if bm < B:
        bm = max(8, (bm // 8) * 8)                      # sublane-aligned tiles

    # Keep >= 2 grid steps when possible so v7x's second TensorCore gets work
    # (the "parallel" axis only shards with >= 2 steps); free on 1-TC parts.
    if bm >= B and B >= 16:
        half = max(8, ((pl.cdiv(B, 2) + 7) // 8) * 8)
        if half < B:
            bm = half

    grid = (pl.cdiv(B, bm),)

    tile_io_bytes = 2 * N_SHELLS * bm * CLP * itemsize
    vmem_limit = int(min(2 * (tile_io_bytes + weight_bytes) + headroom,
                         vmem_cap_limit))

    out2d = pl.pallas_call(
        shell_attention_kernel,
        out_shape=jax.ShapeDtypeStruct((B, N_SHELLS * CLP), s0.dtype),
        grid_spec=pltpu.PrefetchScalarGridSpec(
            num_scalar_prefetch=0,
            grid=grid,
            in_specs=[
                pl.BlockSpec((bm, CLP), lambda i: (i, 0)),                 # shell 0
                pl.BlockSpec((bm, CLP), lambda i: (i, 0)),                 # shell 1
                pl.BlockSpec((bm, CLP), lambda i: (i, 0)),                 # shell 2
                pl.BlockSpec((N_SHELLS * CLP, HIDDEN), lambda i: (0, 0)),  # W1_fold
                pl.BlockSpec((1, HIDDEN), lambda i: (0, 0)),               # b1
                pl.BlockSpec((HIDDEN, N_SHELLS), lambda i: (0, 0)),        # W2
                pl.BlockSpec((1, N_SHELLS), lambda i: (0, 0)),             # b2
            ],
            out_specs=pl.BlockSpec((bm, N_SHELLS * CLP), lambda i: (i, 0)),
        ),
        compiler_params=pltpu.CompilerParams(
            dimension_semantics=("parallel",),
            vmem_limit_bytes=vmem_limit),
    )(x0, x1, x2, w1f, b1, w2, b2)

    # Strip lane padding (no-op when CL % 128 == 0) and restore (B, 3C, L).
    out = out2d.reshape(B, N_SHELLS, CLP)[:, :, :CL]
    return out.reshape(B, N_SHELLS * C, L)              # == cat(weighted, dim=1)


def shell_attention_ref(shells, w1, b1, w2, b2):
    """Pure-JAX reference mirroring the PyTorch forward exactly."""
    concat = jnp.concatenate([s.mean(-1) for s in shells], axis=-1)   # (B, 48)
    h = concat @ w1 + b1
    h = jnp.where(h > 0, h, 0.1 * h)
    logits = h @ w2 + b2
    weights = jax.nn.softmax(logits, axis=-1)                         # (B, 3)
    weighted = [s * weights[:, i][:, None, None] for i, s in enumerate(shells)]
    return jnp.concatenate(weighted, axis=1)                          # (B, 48, L)


if __name__ == "__main__":
    key = jax.random.PRNGKey(0)
    k_s0, k_s1, k_s2, k_w1, k_b1, k_w2, k_b2 = jax.random.split(key, 7)

    B, C, L = 2, 16, 8                      # 3 shells x 16 channels = 48 features
    shells = (
        jax.random.normal(k_s0, (B, C, L), jnp.float32),
        jax.random.normal(k_s1, (B, C, L), jnp.float32),
        jax.random.normal(k_s2, (B, C, L), jnp.float32),
    )

    # Deterministic parameter init (shapes match nn.Linear(48,24), nn.Linear(24,3)).
    # Stored already-transposed: y = x @ W + b.
    w1 = jax.random.uniform(k_w1, (3 * C, HIDDEN), jnp.float32,
                            minval=-1.0, maxval=1.0) / jnp.sqrt(3.0 * C)
    b1 = jax.random.uniform(k_b1, (HIDDEN,), jnp.float32,
                            minval=-1.0, maxval=1.0) / jnp.sqrt(3.0 * C)
    w2 = jax.random.uniform(k_w2, (HIDDEN, N_SHELLS), jnp.float32,
                            minval=-1.0, maxval=1.0) / jnp.sqrt(float(HIDDEN))
    b2 = jax.random.uniform(k_b2, (N_SHELLS,), jnp.float32,
                            minval=-1.0, maxval=1.0) / jnp.sqrt(float(HIDDEN))

    # One-time parameter preprocessing (not part of the per-step forward).
    w1_fold, b1_2d, w2_p, b2_2d = fold_attention_params(w1, b1, w2, b2, L)

    out = shell_attention(shells, w1_fold, b1_2d, w2_p, b2_2d)
    out = jax.block_until_ready(out)

    ref = shell_attention_ref(shells, w1, b1, w2, b2)
    np.testing.assert_allclose(np.asarray(out), np.asarray(ref),
                               rtol=1e-5, atol=1e-5)
    assert out.shape == (B, 3 * C, L)
    print("KERNEL_OK")
</pallas_src>

<mosaic_0001>
module attributes {stable_mosaic.version = 11 : i64} {
  func.func @shell_attention_kernel(%arg0: i32, %arg1: memref<2x128xf32, #tpu.memory_space<vmem>>, %arg2: memref<2x128xf32, #tpu.memory_space<vmem>>, %arg3: memref<2x128xf32, #tpu.memory_space<vmem>>, %arg4: memref<384x24xf32, #tpu.memory_space<vmem>>, %arg5: memref<1x24xf32, #tpu.memory_space<vmem>>, %arg6: memref<24x3xf32, #tpu.memory_space<vmem>>, %arg7: memref<1x3xf32, #tpu.memory_space<vmem>>, %arg8: memref<2x384xf32, #tpu.memory_space<vmem>>) attributes {dimension_semantics = [#tpu.dimension_semantics<parallel>], iteration_bounds = array<i64: 1>, scalar_prefetch = 0 : i64, scratch_operands = 0 : i64, tpu.core_type = #tpu.core_type<tc>, window_params = [{transform_indices = @transform_0, window_bounds = array<i64: 2, 128>}, {transform_indices = @transform_1, window_bounds = array<i64: 2, 128>}, {transform_indices = @transform_2, window_bounds = array<i64: 2, 128>}, {pipeline_mode = #tpu.pipeline_mode<synchronous>, transform_indices = @transform_3, window_bounds = array<i64: 384, 24>}, {pipeline_mode = #tpu.pipeline_mode<synchronous>, transform_indices = @transform_4, window_bounds = array<i64: 1, 24>}, {pipeline_mode = #tpu.pipeline_mode<synchronous>, transform_indices = @transform_5, window_bounds = array<i64: 24, 3>}, {pipeline_mode = #tpu.pipeline_mode<synchronous>, transform_indices = @transform_6, window_bounds = array<i64: 1, 3>}, {transform_indices = @transform_7, window_bounds = array<i64: 2, 384>}]} {
    %c0 = arith.constant 0 : index
    %c0_0 = arith.constant 0 : index
    %0 = vector.load %arg1[%c0, %c0_0] : memref<2x128xf32, #tpu.memory_space<vmem>>, vector<2x128xf32>
    %c0_1 = arith.constant 0 : index
    %c0_2 = arith.constant 0 : index
    %1 = vector.load %arg4[%c0_1, %c0_2] : memref<384x24xf32, #tpu.memory_space<vmem>>, vector<128x24xf32>
    %cst = arith.constant dense<0.000000e+00> : vector<2x24xf32>
    %2 = tpu.matmul %0, %1, %cst {dimension_numbers = #tpu.dot_dimension_numbers<[1], [0], [0], [1], [0, 0, 1, 1], [], []>, precision = #tpu.contract_precision<fp32>} : vector<2x128xf32>, vector<128x24xf32>, vector<2x24xf32> -> vector<2x24xf32>
    %c0_3 = arith.constant 0 : index
    %c0_4 = arith.constant 0 : index
    %3 = vector.load %arg2[%c0_3, %c0_4] : memref<2x128xf32, #tpu.memory_space<vmem>>, vector<2x128xf32>
    %c128 = arith.constant 128 : index
    %c0_5 = arith.constant 0 : index
    %4 = vector.load %arg4[%c128, %c0_5] : memref<384x24xf32, #tpu.memory_space<vmem>>, vector<128x24xf32>
    %cst_6 = arith.constant dense<0.000000e+00> : vector<2x24xf32>
    %5 = tpu.matmul %3, %4, %cst_6 {dimension_numbers = #tpu.dot_dimension_numbers<[1], [0], [0], [1], [0, 0, 1, 1], [], []>, precision = #tpu.contract_precision<fp32>} : vector<2x128xf32>, vector<128x24xf32>, vector<2x24xf32> -> vector<2x24xf32>
    %6 = arith.addf %2, %5 : vector<2x24xf32>
    %c0_7 = arith.constant 0 : index
    %c0_8 = arith.constant 0 : index
    %7 = vector.load %arg3[%c0_7, %c0_8] : memref<2x128xf32, #tpu.memory_space<vmem>>, vector<2x128xf32>
    %c256 = arith.constant 256 : index
    %c0_9 = arith.constant 0 : index
    %8 = vector.load %arg4[%c256, %c0_9] : memref<384x24xf32, #tpu.memory_space<vmem>>, vector<128x24xf32>
    %cst_10 = arith.constant dense<0.000000e+00> : vector<2x24xf32>
    %9 = tpu.matmul %7, %8, %cst_10 {dimension_numbers = #tpu.dot_dimension_numbers<[1], [0], [0], [1], [0, 0, 1, 1], [], []>, precision = #tpu.contract_precision<fp32>} : vector<2x128xf32>, vector<128x24xf32>, vector<2x24xf32> -> vector<2x24xf32>
    %10 = arith.addf %6, %9 : vector<2x24xf32>
    %c0_11 = arith.constant 0 : index
    %c0_12 = arith.constant 0 : index
    %11 = vector.load %arg5[%c0_11, %c0_12] : memref<1x24xf32, #tpu.memory_space<vmem>>, vector<1x24xf32>
    %12 = vector.broadcast %11 : vector<1x24xf32> to vector<2x24xf32>
    %13 = arith.addf %10, %12 : vector<2x24xf32>
    %cst_13 = arith.constant 0.000000e+00 : f32
    %14 = vector.broadcast %cst_13 : f32 to vector<2x24xf32>
    %15 = arith.cmpf ogt, %13, %14 : vector<2x24xf32>
    %cst_14 = arith.constant 1.000000e-01 : f32
    %16 = vector.broadcast %cst_14 : f32 to vector<2x24xf32>
    %17 = arith.mulf %16, %13 : vector<2x24xf32>
    %18 = arith.select %15, %13, %17 : vector<2x24xi1>, vector<2x24xf32>
    %c0_15 = arith.constant 0 : index
    %c0_16 = arith.constant 0 : index
    %19 = vector.load %arg6[%c0_15, %c0_16] : memref<24x3xf32, #tpu.memory_space<vmem>>, vector<24x3xf32>
    %cst_17 = arith.constant dense<0.000000e+00> : vector<2x3xf32>
    %20 = tpu.matmul %18, %19, %cst_17 {dimension_numbers = #tpu.dot_dimension_numbers<[1], [0], [0], [1], [0, 0, 1, 1], [], []>, precision = #tpu.contract_precision<fp32>} : vector<2x24xf32>, vector<24x3xf32>, vector<2x3xf32> -> vector<2x3xf32>
    %c0_18 = arith.constant 0 : index
    %c0_19 = arith.constant 0 : index
    %21 = vector.load %arg7[%c0_18, %c0_19] : memref<1x3xf32, #tpu.memory_space<vmem>>, vector<1x3xf32>
    %22 = vector.broadcast %21 : vector<1x3xf32> to vector<2x3xf32>
    %23 = arith.addf %20, %22 : vector<2x3xf32>
    %cst_20 = arith.constant dense<0xFF800000> : vector<2xf32>
    %24 = vector.multi_reduction <maximumf>, %23, %cst_20 [1] : vector<2x3xf32> to vector<2xf32>
    %25 = vector.shape_cast %24 : vector<2xf32> to vector<2x1xf32>
    %26 = vector.broadcast %25 : vector<2x1xf32> to vector<2x3xf32>
    %27 = arith.subf %23, %26 : vector<2x3xf32>
    %28 = math.exp %27 : vector<2x3xf32>
    %cst_21 = arith.constant dense<0.000000e+00> : vector<2xf32>
    %29 = vector.multi_reduction <add>, %28, %cst_21 [1] : vector<2x3xf32> to vector<2xf32>
    %30 = vector.shape_cast %29 : vector<2xf32> to vector<2x1xf32>
    %31 = tpu.reciprocal %30 : vector<2x1xf32> -> vector<2x1xf32>
    %32 = vector.broadcast %31 : vector<2x1xf32> to vector<2x3xf32>
    %33 = arith.mulf %28, %32 : vector<2x3xf32>
    %c0_22 = arith.constant 0 : index
    %c0_23 = arith.constant 0 : index
    %34 = vector.load %arg1[%c0_22, %c0_23] : memref<2x128xf32, #tpu.memory_space<vmem>>, vector<2x128xf32>
    %35 = vector.extract_strided_slice %33 {offsets = [0, 0], sizes = [2, 1], strides = [1, 1]} : vector<2x3xf32> to vector<2x1xf32>
    %36 = vector.broadcast %35 : vector<2x1xf32> to vector<2x128xf32>
    %37 = arith.mulf %34, %36 : vector<2x128xf32>
    %c0_24 = arith.constant 0 : index
    %c0_25 = arith.constant 0 : index
    %38 = vector.load %arg8[%c0_24, %c0_25] : memref<2x384xf32, #tpu.memory_space<vmem>>, vector<2x128xf32>
    tpu.vector_store %arg8[%c0_24, %c0_25], %37 {strides = array<i32>} : memref<2x384xf32, #tpu.memory_space<vmem>>, vector<2x128xf32>,
    %c0_26 = arith.constant 0 : index
    %c0_27 = arith.constant 0 : index
    %39 = vector.load %arg2[%c0_26, %c0_27] : memref<2x128xf32, #tpu.memory_space<vmem>>, vector<2x128xf32>
    %40 = vector.extract_strided_slice %33 {offsets = [0, 1], sizes = [2, 1], strides = [1, 1]} : vector<2x3xf32> to vector<2x1xf32>
    %41 = vector.broadcast %40 : vector<2x1xf32> to vector<2x128xf32>
    %42 = arith.mulf %39, %41 : vector<2x128xf32>
    %c0_28 = arith.constant 0 : index
    %c128_29 = arith.constant 128 : index
    %43 = vector.load %arg8[%c0_28, %c128_29] : memref<2x384xf32, #tpu.memory_space<vmem>>, vector<2x128xf32>
    tpu.vector_store %arg8[%c0_28, %c128_29], %42 {strides = array<i32>} : memref<2x384xf32, #tpu.memory_space<vmem>>, vector<2x128xf32>,
    %c0_30 = arith.constant 0 : index
    %c0_31 = arith.constant 0 : index
    %44 = vector.load %arg3[%c0_30, %c0_31] : memref<2x128xf32, #tpu.memory_space<vmem>>, vector<2x128xf32>
    %45 = vector.extract_strided_slice %33 {offsets = [0, 2], sizes = [2, 1], strides = [1, 1]} : vector<2x3xf32> to vector<2x1xf32>
    %46 = vector.broadcast %45 : vector<2x1xf32> to vector<2x128xf32>
    %47 = arith.mulf %44, %46 : vector<2x128xf32>
    %c0_32 = arith.constant 0 : index
    %c256_33 = arith.constant 256 : index
    %48 = vector.load %arg8[%c0_32, %c256_33] : memref<2x384xf32, #tpu.memory_space<vmem>>, vector<2x128xf32>
    tpu.vector_store %arg8[%c0_32, %c256_33], %47 {strides = array<i32>} : memref<2x384xf32, #tpu.memory_space<vmem>>, vector<2x128xf32>,
    return
  }
  func.func @transform_0(%arg0: i32) -> (i32, i32) {
    %c0_i32 = arith.constant 0 : i32
    %c0_i32_0 = arith.constant 0 : i32
    return %arg0, %c0_i32 : i32, i32
  }
  func.func @transform_1(%arg0: i32) -> (i32, i32) {
    %c0_i32 = arith.constant 0 : i32
    %c0_i32_0 = arith.constant 0 : i32
    return %arg0, %c0_i32 : i32, i32
  }
  func.func @transform_2(%arg0: i32) -> (i32, i32) {
    %c0_i32 = arith.constant 0 : i32
    %c0_i32_0 = arith.constant 0 : i32
    return %arg0, %c0_i32 : i32, i32
  }
  func.func @transform_3(%arg0: i32) -> (i32, i32) {
    %c0_i32 = arith.constant 0 : i32
    %c0_i32_0 = arith.constant 0 : i32
    %c0_i32_1 = arith.constant 0 : i32
    return %c0_i32, %c0_i32_0 : i32, i32
  }
  func.func @transform_4(%arg0: i32) -> (i32, i32) {
    %c0_i32 = arith.constant 0 : i32
    %c0_i32_0 = arith.constant 0 : i32
    %c0_i32_1 = arith.constant 0 : i32
    return %c0_i32, %c0_i32_0 : i32, i32
  }
  func.func @transform_5(%arg0: i32) -> (i32, i32) {
    %c0_i32 = arith.constant 0 : i32
    %c0_i32_0 = arith.constant 0 : i32
    %c0_i32_1 = arith.constant 0 : i32
    return %c0_i32, %c0_i32_0 : i32, i32
  }
  func.func @transform_6(%arg0: i32) -> (i32, i32) {
    %c0_i32 = arith.constant 0 : i32
    %c0_i32_0 = arith.constant 0 : i32
    %c0_i32_1 = arith.constant 0 : i32
    return %c0_i32, %c0_i32_0 : i32, i32
  }
  func.func @transform_7(%arg0: i32) -> (i32, i32) {
    %c0_i32 = arith.constant 0 : i32
    %c0_i32_0 = arith.constant 0 : i32
    return %arg0, %c0_i32 : i32, i32
  }
}

</mosaic_0001>

<bundles_post_ra>
// kernel: shell_attention.1
= control target key start
LH: loop header
LB: loop body
LE: loop exit
PB: predicated region body
PF: predicated region fallthrough
CT: control target
= control target key end

     0   :  { %v3564_v0 = vmov 0.0   ;;  %vm3565_vm0 = vmmov 0   ;;  %vm2022_vm2 = vcmask 195584   ;;  %vm2498_vm3 = vcmask 17408   ;;  %s4959_s3 = inlined_call_operand.vmem [shape: f32[384,24], index: 3, kind: input, shape index: {}]   ;;  %s4960_s1 = inlined_call_operand.vmem [shape: f32[2,128], index: 1, kind: input, shape index: {}]   ;;  %s4961_s0 = inlined_call_operand.vmem [shape: f32[2,128], index: 0, kind: input, shape index: {}]   ;;  %s4962_s2 = inlined_call_operand.vmem [shape: f32[2,128], index: 2, kind: input, shape index: {}]   ;;  %s4963_s5 = inlined_call_operand.vmem [shape: f32[24,3], index: 5, kind: input, shape index: {}]   ;;  %s4964_s4 = inlined_call_operand.vmem [shape: f32[1,24], index: 4, kind: input, shape index: {}]   ;;  %s4965_s6 = inlined_call_operand.vmem [shape: f32[1,3], index: 6, kind: input, shape index: {}]   ;;  %s4966_s7 = inlined_call_operand.vmem [shape: f32[2,384], index: 7, kind: output, shape index: {}]  }
   0x1   :  { %2867 = vmatprep.subr.mxu0 %v3564_v0  ;;  %v59_v1 = vld [vmem:[%s4959_s3 + $0xf8] sm:$0xff]  ;;  %v58_v2 = vld [vmem:[%s4959_s3 + $0xf0] sm:$0xff]  ;;  %v57_v3 = vld [vmem:[%s4959_s3 + $0xe8] sm:$0xff]  ;;  %2902 = vmatprep.subr.mxu1 %v3564_v0 }
   0x2   :  { %v3620_v4 = vand.u32 4294901760, %v59_v1  ;;  %v3622_v5 = vand.u32 4294901760, %v58_v2  ;;  %v3624_v6 = vand.u32 4294901760, %v57_v3  ;;  %v56_v7 = vld [vmem:[%s4959_s3 + $0xe0] sm:$0xff]  ;;  %v55_v8 = vld [vmem:[%s4959_s3 + $0xd8] sm:$0xff]  ;;  %v54_v9 = vld [vmem:[%s4959_s3 + $0xd0] sm:$0xff]  ;;  %2899 = vmatprep.mubr.msk.f32.mxu0 %vm3565_vm0, %v3564_v0  ;;  %2934 = vmatprep.mubr.msk.f32.mxu1 %vm3565_vm0, %v3564_v0 }
   0x3   :  { %v3639_v10 = vand.u32 4294901760, %v56_v7  ;;  %v3641_v11 = vand.u32 4294901760, %v55_v8  ;;  %v3643_v12 = vand.u32 4294901760, %v54_v9  ;;  %v53_v13 = vld [vmem:[%s4959_s3 + $0xc8] sm:$0xff]  ;;  %v52_v14 = vld [vmem:[%s4959_s3 + $0xc0] sm:$0xff]  ;;  %v51_v19 = vld [vmem:[%s4959_s3 + $0xb8] sm:$0xff] }
   0x4   :  { %2868 = vmatpush3.msra.mxu0 %v3620_v4  ;;  %v3653_v15 = vsub.f32 %v59_v1, %v3620_v4  ;;  %v3656_v16 = vsub.f32 %v58_v2, %v3622_v5  ;;  %v3658_v17 = vand.u32 4294901760, %v53_v13  ;;  %v3661_v18 = vsub.f32 %v57_v3, %v3624_v6  ;;  %v50_v26 = vld [vmem:[%s4959_s3 + $0xb0] sm:$0xff]  ;;  %v49_v36 = vld [vmem:[%s4959_s3 + $0xa8] sm:$0xff]  ;;  %v48_v41 = vld [vmem:[%s4959_s3 + $0xa0] sm:$0xff] }
   0x5   :  { %2869 = vmatprep.subr.mxu0 %v3564_v0  ;;  %v3668_v20 = vsub.f32 %v56_v7, %v3639_v10  ;;  %v3671_v21 = vsub.f32 %v55_v8, %v3641_v11  ;;  %v3677_v25 = vand.u32 4294901760, %v52_v14  ;;  %v3684_v28 = vand.u32 4294901760, %v51_v19  ;;  %v47_v49 = vld [vmem:[%s4959_s3 + $0x98] sm:$0xff]  ;;  %v43_v50 = vld [vmem:[%s4960_s1] sm:$0x3]  ;;  %v46_v54 = vld [vmem:[%s4959_s3 + $0x90] sm:$0xff] }
   0x6   :  { %2870 = vmatpush3.msra.mxu0 %v3622_v5  ;;  %v154_v22 = vand.u32 4294901760, %v3653_v15  ;;  %v161_v23 = vand.u32 4294901760, %v3656_v16  ;;  %v168_v24 = vand.u32 4294901760, %v3661_v18  ;;  %v3688_v30 = vsub.f32 %v54_v9, %v3643_v12  ;;  %v45_v60 = vld [vmem:[%s4959_s3 + $0x88] sm:$0xff]  ;;  %v44_v7 = vld [vmem:[%s4959_s3 + $0x80] sm:$0xff] }
   0x7   :  { %2871 = vmatprep.subr.mxu0 %v3564_v0  ;;  %v175_v27 = vand.u32 4294901760, %v3668_v20  ;;  %v182_v29 = vand.u32 4294901760, %v3671_v21  ;;  %v3701_v34 = vsub.f32 %v53_v13, %v3658_v17  ;;  %v3704_v35 = vand.u32 4294901760, %v50_v26 }
   0x8   :  { %2872 = vmatpush3.msra.mxu0 %v3624_v6  ;;  %v155_v31 = vsub.f32 %v3653_v15, %v154_v22  ;;  %v162_v32 = vsub.f32 %v3656_v16, %v161_v23  ;;  %v169_v33 = vsub.f32 %v3661_v18, %v168_v24  ;;  %v189_v40 = vand.u32 4294901760, %v3688_v30 }
   0x9   :  { %2873 = vmatprep.subr.mxu0 %v3564_v0  ;;  %v176_v39 = vsub.f32 %v3668_v20, %v175_v27  ;;  %v183_v42 = vsub.f32 %v3671_v21, %v182_v29  ;;  %v3722_v43 = vsub.f32 %v52_v14, %v3677_v25  ;;  %v3725_v45 = vand.u32 4294901760, %v49_v36 }
   0xa   :  { %2874 = vmatpush3.msra.mxu0 %v3639_v10  ;;  %v156_v37 = vand.u32 4294901760, %v155_v31  ;;  %v163_v38 = vand.u32 4294901760, %v162_v32  ;;  %v170_v44 = vand.u32 4294901760, %v169_v33  ;;  %v196_v46 = vand.u32 4294901760, %v3701_v34 }
   0xb   :  { %2875 = vmatprep.subr.mxu0 %v3564_v0  ;;  %v3729_v47 = vsub.f32 %v51_v19, %v3684_v28  ;;  %v3733_v48 = vand.u32 4294901760, %v48_v41  ;;  %v177_v51 = vand.u32 4294901760, %v176_v39  ;;  %v190_v52 = vsub.f32 %v3688_v30, %v189_v40 }
   0xc   :  { %2876 = vmatpush3.msra.mxu0 %v3641_v11  ;;  %2903 = vmatpush3.msra.mxu1 %v156_v37  ;;  %v203_v53 = vand.u32 4294901760, %v3722_v43  ;;  %v3750_v55 = vsub.f32 %v50_v26, %v3704_v35  ;;  %v184_v56 = vand.u32 4294901760, %v183_v42  ;;  %v197_v58 = vsub.f32 %v3701_v34, %v196_v46 }
   0xd   :  { %2877 = vmatprep.subr.mxu0 %v3564_v0  ;;  %2904 = vmatprep.subr.mxu1 %v3564_v0  ;;  %v210_v57 = vand.u32 4294901760, %v3729_v47  ;;  %v3759_v59 = vand.u32 4294901760, %v47_v49  ;;  %v3765_v61 = vsub.f32 %v49_v36, %v3725_v45  ;;  %v3767_v62 = vand.u32 4294901760, %v43_v50 }
   0xe   :  { %2878 = vmatpush3.msra.mxu0 %v3643_v12  ;;  %2905 = vmatpush3.msra.mxu1 %v163_v38  ;;  %v3771_v63 = vand.u32 4294901760, %v46_v54  ;;  %v191_v1 = vand.u32 4294901760, %v190_v52  ;;  %v204_v2 = vsub.f32 %v3722_v43, %v203_v53  ;;  %v217_v3 = vand.u32 4294901760, %v3750_v55 }
   0xf   :  { %2879 = vmatprep.subr.mxu0 %v3564_v0  ;;  %2906 = vmatprep.subr.mxu1 %v3564_v0  ;;  %v3782_v8 = vsub.f32 %v48_v41, %v3733_v48  ;;  %v211_v9 = vsub.f32 %v3729_v47, %v210_v57  ;;  %v3789_v13 = vand.u32 4294901760, %v45_v60  ;;  %v198_v14 = vand.u32 4294901760, %v197_v58 }
  0x10   :  { %2880 = vmatpush3.msra.mxu0 %v3658_v17  ;;  %2907 = vmatpush3.msra.mxu1 %v170_v44  ;;  %v224_v19 = vand.u32 4294901760, %v3765_v61  ;;  %v3794_v26 = vsub.f32 %v43_v50, %v3767_v62  ;;  %v3797_v31 = vsub.f32 %v47_v49, %v3759_v59  ;;  %v3801_v32 = vand.u32 4294901760, %v44_v7 }
  0x11   :  { %2881 = vmatprep.subr.mxu0 %v3564_v0  ;;  %2908 = vmatprep.subr.mxu1 %v3564_v0  ;;  %v205_v33 = vand.u32 4294901760, %v204_v2  ;;  %v218_v36 = vsub.f32 %v3750_v55, %v217_v3  ;;  %v231_v37 = vand.u32 4294901760, %v3782_v8  ;;  %v3809_v38 = vsub.f32 %v46_v54, %v3771_v63 }
  0x12   :  { %2882 = vmatpush3.msra.mxu0 %v3677_v25  ;;  %2909 = vmatpush3.msra.mxu1 %v177_v51  ;;  %v212_v39 = vand.u32 4294901760, %v211_v9  ;;  %v225_v41 = vsub.f32 %v3765_v61, %v224_v19  ;;  %v143_v42 = vand.u32 4294901760, %v3794_v26  ;;  %v238_v44 = vand.u32 4294901760, %v3797_v31 }
  0x13   :  { %2883 = vmatprep.subr.mxu0 %v3564_v0  ;;  %2910 = vmatprep.subr.mxu1 %v3564_v0  ;;  %v3820_v49 = vsub.f32 %v45_v60, %v3789_v13  ;;  %v219_v50 = vand.u32 4294901760, %v218_v36  ;;  %v232_v51 = vsub.f32 %v3782_v8, %v231_v37  ;;  %v245_v52 = vand.u32 4294901760, %v3809_v38 }
  0x14   :  { %2884 = vmatpush3.msra.mxu0 %v3684_v28  ;;  %2911 = vmatpush3.msra.mxu1 %v184_v56  ;;  %v3830_v54 = vsub.f32 %v44_v7, %v3801_v32  ;;  %v226_v56 = vand.u32 4294901760, %v225_v41  ;;  %v144_v58 = vsub.f32 %v3794_v26, %v143_v42  ;;  %v239_v60 = vsub.f32 %v3797_v31, %v238_v44 }
  0x15   :  { %2885 = vmatprep.subr.mxu0 %v3564_v0  ;;  %2912 = vmatprep.subr.mxu1 %v3564_v0  ;;  %v233_v2 = vand.u32 4294901760, %v232_v51  ;;  %v246_v7 = vsub.f32 %v3809_v38, %v245_v52 }
  0x16   :  { %2886 = vmatpush3.msra.mxu0 %v3704_v35  ;;  %2913 = vmatpush3.msra.mxu1 %v191_v1  ;;  %v252_v1 = vand.u32 4294901760, %v3820_v49  ;;  %v259_v9 = vand.u32 4294901760, %v3830_v54 }
  0x17   :  { %2887 = vmatprep.subr.mxu0 %v3564_v0  ;;  %2914 = vmatprep.subr.mxu1 %v3564_v0 }
  0x18   :  { %2888 = vmatpush3.msra.mxu0 %v3725_v45  ;;  %2915 = vmatpush3.msra.mxu1 %v198_v14  ;;  %v145_v14 = vand.u32 4294901760, %v144_v58  ;;  %v253_v36 = vsub.f32 %v3820_v49, %v252_v1  ;;  %v260_v41 = vsub.f32 %v3830_v54, %v259_v9 }
  0x19   :  { %2889 = vmatprep.subr.mxu0 %v3564_v0  ;;  %2916 = vmatprep.subr.mxu1 %v3564_v0 }
  0x1a   :  { %2890 = vmatpush3.msra.mxu0 %v3733_v48  ;;  %2917 = vmatpush3.msra.mxu1 %v205_v33  ;;  %v240_v33 = vand.u32 4294901760, %v239_v60  ;;  %v261_v51 = vand.u32 4294901760, %v260_v41 }
  0x1b   :  { %2891 = vmatprep.subr.mxu0 %v3564_v0  ;;  %2918 = vmatprep.subr.mxu1 %v3564_v0 }
  0x1c   :  { %2892 = vmatpush3.msra.mxu0 %v3759_v59  ;;  %2919 = vmatpush3.msra.mxu1 %v212_v39  ;;  %v247_v39 = vand.u32 4294901760, %v246_v7 }
  0x1d   :  { %2893 = vmatprep.subr.mxu0 %v3564_v0  ;;  %2920 = vmatprep.subr.mxu1 %v3564_v0 }
  0x1e   :  { %2894 = vmatpush3.msra.mxu0 %v3771_v63  ;;  %2921 = vmatpush3.msra.mxu1 %v219_v50  ;;  %v254_v50 = vand.u32 4294901760, %v253_v36 }
  0x1f   :  { %2895 = vmatprep.subr.mxu0 %v3564_v0  ;;  %2922 = vmatprep.subr.mxu1 %v3564_v0 }
  0x20   :  { %2896 = vmatpush3.msra.mxu0 %v3789_v13  ;;  %2923 = vmatpush3.msra.mxu1 %v226_v56 }
  0x21   :  { %2897 = vmatprep.subr.mxu0 %v3564_v0  ;;  %2924 = vmatprep.subr.mxu1 %v3564_v0 }
  0x22   :  { %2898 = vmatpush3.msra.mxu0 %v3801_v32  ;;  %2925 = vmatpush3.msra.mxu1 %v233_v2 }
  0x23   :  { %2926 = vmatprep.subr.mxu1 %v3564_v0  ;;  %2937 = vmatprep.subr.mxu0 %v3564_v0 }
  0x24   :  { %2900 = vmatmul.mubr.f32.vlgmr.msra.gmra.mxu0 %v145_v14  ;;  %2927 = vmatpush3.msra.mxu1 %v240_v33 }
  0x25   :  { %2938 = vmatpush3.msra.mxu0 %v3653_v15  ;;  %2928 = vmatprep.subr.mxu1 %v3564_v0 }
  0x26   :  { %2939 = vmatprep.subr.mxu0 %v3564_v0  ;;  %2929 = vmatpush3.msra.mxu1 %v247_v39  ;;  %v29_v39 = vld [vmem:[%s4959_s3 + $0x10] sm:$0xff] }
  0x27   :  { %2940 = vmatpush3.msra.mxu0 %v3656_v16  ;;  %2930 = vmatprep.subr.mxu1 %v3564_v0 }
  0x28   :  { %2941 = vmatprep.subr.mxu0 %v3564_v0  ;;  %2931 = vmatpush3.msra.mxu1 %v254_v50 }
  0x29   :  { %2942 = vmatpush3.msra.mxu0 %v3661_v18  ;;  %2932 = vmatprep.subr.mxu1 %v3564_v0  ;;  %v38_v18 = vld [vmem:[%s4959_s3 + $0x58] sm:$0xff] }
  0x2a   :  { %2943 = vmatprep.subr.mxu0 %v3564_v0  ;;  %2933 = vmatpush3.msra.mxu1 %v261_v51 }
  0x2b   :  { %2944 = vmatpush3.msra.mxu0 %v3668_v20  ;;  %2935 = vmatmul.mubr.f32.vlgmr.msra.gmra.mxu1 %v3767_v62 }
  0x2c   :  { %2945 = vmatprep.subr.mxu0 %v3564_v0  ;;  %2972 = vmatprep.subr.mxu1 %v3564_v0 }
  0x2d   :  { %2946 = vmatpush3.msra.mxu0 %v3671_v21  ;;  %2973 = vmatpush3.msra.mxu1 %v3620_v4  ;;  %v37_v21 = vld [vmem:[%s4959_s3 + $0x50] sm:$0xff] }
  0x2e   :  { %2947 = vmatprep.subr.mxu0 %v3564_v0  ;;  %2974 = vmatprep.subr.mxu1 %v3564_v0 }
  0x2f   :  { %2948 = vmatpush3.msra.mxu0 %v3688_v30  ;;  %2975 = vmatpush3.msra.mxu1 %v3622_v5  ;;  %v35_v30 = vld [vmem:[%s4959_s3 + $0x40] sm:$0xff] }
  0x30   :  { %2949 = vmatprep.subr.mxu0 %v3564_v0  ;;  %2976 = vmatprep.subr.mxu1 %v3564_v0 }
  0x31   :  { %2950 = vmatpush3.msra.mxu0 %v3701_v34  ;;  %2977 = vmatpush3.msra.mxu1 %v3624_v6 }
  0x32   :  { %2951 = vmatprep.subr.mxu0 %v3564_v0  ;;  %2978 = vmatprep.subr.mxu1 %v3564_v0 }
  0x33   :  { %2952 = vmatpush3.msra.mxu0 %v3722_v43  ;;  %2979 = vmatpush3.msra.mxu1 %v3639_v10 }
  0x34   :  { %2953 = vmatprep.subr.mxu0 %v3564_v0  ;;  %2980 = vmatprep.subr.mxu1 %v3564_v0 }
  0x35   :  { %2954 = vmatpush3.msra.mxu0 %v3729_v47  ;;  %2981 = vmatpush3.msra.mxu1 %v3641_v11 }
  0x36   :  { %2955 = vmatprep.subr.mxu0 %v3564_v0  ;;  %2982 = vmatprep.subr.mxu1 %v3564_v0 }
  0x37   :  { %2956 = vmatpush3.msra.mxu0 %v3750_v55  ;;  %2983 = vmatpush3.msra.mxu1 %v3643_v12 }
  0x38   :  { %2957 = vmatprep.subr.mxu0 %v3564_v0  ;;  %2984 = vmatprep.subr.mxu1 %v3564_v0 }
  0x39   :  { %2958 = vmatpush3.msra.mxu0 %v3765_v61  ;;  %2985 = vmatpush3.msra.mxu1 %v3658_v17 }
  0x3a   :  { %2959 = vmatprep.subr.mxu0 %v3564_v0  ;;  %2986 = vmatprep.subr.mxu1 %v3564_v0 }
  0x3b   :  { %2960 = vmatpush3.msra.mxu0 %v3782_v8  ;;  %2987 = vmatpush3.msra.mxu1 %v3677_v25 }
  0x3c   :  { %2961 = vmatprep.subr.mxu0 %v3564_v0  ;;  %2988 = vmatprep.subr.mxu1 %v3564_v0 }
  0x3d   :  { %2962 = vmatpush3.msra.mxu0 %v3797_v31  ;;  %2989 = vmatpush3.msra.mxu1 %v3684_v28 }
  0x3e   :  { %2963 = vmatprep.subr.mxu0 %v3564_v0  ;;  %2990 = vmatprep.subr.mxu1 %v3564_v0 }
  0x3f   :  { %2964 = vmatpush3.msra.mxu0 %v3809_v38  ;;  %2991 = vmatpush3.msra.mxu1 %v3704_v35 }
  0x40   :  { %2965 = vmatprep.subr.mxu0 %v3564_v0  ;;  %2992 = vmatprep.subr.mxu1 %v3564_v0 }
  0x41   :  { %2966 = vmatpush3.msra.mxu0 %v3820_v49  ;;  %2993 = vmatpush3.msra.mxu1 %v3725_v45  ;;  %v31_v49 = vld [vmem:[%s4959_s3 + $0x20] sm:$0xff] }
  0x42   :  { %2967 = vmatprep.subr.mxu0 %v3564_v0  ;;  %2994 = vmatprep.subr.mxu1 %v3564_v0  ;;  %v4159_v2 = vand.u32 4294901760, %v31_v49 }
  0x43   :  { %2968 = vmatpush3.msra.mxu0 %v3830_v54  ;;  %2969 = vmatprep.mubr.msk.f32.mxu0 %vm3565_vm0, %v3564_v0 }
  0x44   :  { %2995 = vmatpush3.msra.mxu1 %v3733_v48  ;;  %2970 = vmatmul.mubr.f32.vlgmr.msra.gmra.mxu0 %v3794_v26 }
  0x45   :  { %2996 = vmatprep.subr.mxu1 %v3564_v0  ;;  %3007 = vmatprep.subr.mxu0 %v3564_v0 }
  0x46   :  { %2997 = vmatpush3.msra.mxu1 %v3759_v59  ;;  %3008 = vmatpush3.msra.mxu0 %v154_v22 }
  0x47   :  { %2998 = vmatprep.subr.mxu1 %v3564_v0  ;;  %3009 = vmatprep.subr.mxu0 %v3564_v0 }
  0x48   :  { %2999 = vmatpush3.msra.mxu1 %v3771_v63  ;;  %3010 = vmatpush3.msra.mxu0 %v161_v23  ;;  %v4045_v23 = vand.u32 4294901760, %v38_v18 }
  0x49   :  { %3000 = vmatprep.subr.mxu1 %v3564_v0  ;;  %3011 = vmatprep.subr.mxu0 %v3564_v0 }
  0x4a   :  { %3001 = vmatpush3.msra.mxu1 %v3789_v13  ;;  %3012 = vmatpush3.msra.mxu0 %v168_v24  ;;  %v4069_v34 = vsub.f32 %v38_v18, %v4045_v23 }
  0x4b   :  { %3002 = vmatprep.subr.mxu1 %v3564_v0  ;;  %3013 = vmatprep.subr.mxu0 %v3564_v0 }
  0x4c   :  { %3003 = vmatpush3.msra.mxu1 %v3801_v32  ;;  %3004 = vmatprep.mubr.msk.f32.mxu1 %vm3565_vm0, %v3564_v0 }
  0x4d   :  { %3014 = vmatpush3.msra.mxu0 %v175_v27  ;;  %3005 = vmatmul.mubr.f32.vlgmr.msra.gmra.mxu1 %v143_v42  ;;  %v36_v27 = vld [vmem:[%s4959_s3 + $0x48] sm:$0xff] }
  0x4e   :  { %3015 = vmatprep.subr.mxu0 %v3564_v0  ;;  %3042 = vmatprep.subr.mxu1 %v3564_v0 }
  0x4f   :  { %3016 = vmatpush3.msra.mxu0 %v182_v29  ;;  %3043 = vmatpush3.msra.mxu1 %v3620_v4  ;;  %v42_v4 = vld [vmem:[%s4959_s3 + $0x78] sm:$0xff]  ;;  %v4059_v29 = vand.u32 4294901760, %v37_v21 }
  0x50   :  { %3017 = vmatprep.subr.mxu0 %v3564_v0  ;;  %3044 = vmatprep.subr.mxu1 %v3564_v0 }
  0x51   :  { %3018 = vmatpush3.msra.mxu0 %v189_v40  ;;  %3045 = vmatpush3.msra.mxu1 %v3622_v5  ;;  %v41_v5 = vld [vmem:[%s4959_s3 + $0x70] sm:$0xff]  ;;  %v4074_v40 = vand.u32 4294901760, %v36_v27  ;;  %v4088_v47 = vsub.f32 %v37_v21, %v4059_v29 }
  0x52   :  { %3019 = vmatprep.subr.mxu0 %v3564_v0  ;;  %3046 = vmatprep.subr.mxu1 %v3564_v0 }
  0x53   :  { %3020 = vmatpush3.msra.mxu0 %v196_v46  ;;  %3047 = vmatpush3.msra.mxu1 %v3624_v6  ;;  %v3995_v6 = vand.u32 4294901760, %v42_v4  ;;  %v4103_v61 = vsub.f32 %v36_v27, %v4074_v40 }
  0x54   :  { %3021 = vmatprep.subr.mxu0 %v3564_v0  ;;  %3048 = vmatprep.subr.mxu1 %v3564_v0 }
  0x55   :  { %3022 = vmatpush3.msra.mxu0 %v203_v53  ;;  %3049 = vmatpush3.msra.mxu1 %v3639_v10  ;;  %v3999_v10 = vand.u32 4294901760, %v41_v5  ;;  %v4016_v15 = vsub.f32 %v42_v4, %v3995_v6 }
  0x56   :  { %3023 = vmatprep.subr.mxu0 %v3564_v0  ;;  %3050 = vmatprep.subr.mxu1 %v3564_v0 }
  0x57   :  { %3024 = vmatpush3.msra.mxu0 %v210_v57  ;;  %3051 = vmatpush3.msra.mxu1 %v3641_v11  ;;  %v40_v11 = vld [vmem:[%s4959_s3 + $0x68] sm:$0xff]  ;;  %v795_v24 = vand.u32 4294901760, %v4016_v15  ;;  %v33_v57 = vld [vmem:[%s4959_s3 + $0x30] sm:$0xff] }
  0x58   :  { %3025 = vmatprep.subr.mxu0 %v3564_v0  ;;  %3052 = vmatprep.subr.mxu1 %v3564_v0  ;;  %v4018_v16 = vand.u32 4294901760, %v40_v11  ;;  %v4123_v31 = vand.u32 4294901760, %v33_v57 }
  0x59   :  { %3026 = vmatpush3.msra.mxu0 %v217_v3  ;;  %3053 = vmatpush3.msra.mxu1 %v3643_v12  ;;  %v39_v12 = vld [vmem:[%s4959_s3 + $0x60] sm:$0xff]  ;;  %v823_v3 = vand.u32 4294901760, %v4069_v34 }
  0x5a   :  { %3027 = vmatprep.subr.mxu0 %v3564_v0  ;;  %3054 = vmatprep.subr.mxu1 %v3564_v0  ;;  %v4031_v20 = vand.u32 4294901760, %v39_v12  ;;  %v4043_v22 = vsub.f32 %v40_v11, %v4018_v16  ;;  %v4148_v56 = vsub.f32 %v33_v57, %v4123_v31  ;;  %v4189_v11 = vsub.f32 %v31_v49, %v4159_v2 }
  0x5b   :  { %3028 = vmatpush3.msra.mxu0 %v224_v19  ;;  %3055 = vmatpush3.msra.mxu1 %v3658_v17  ;;  %v4023_v17 = vsub.f32 %v41_v5, %v3999_v10  ;;  %v824_v38 = vsub.f32 %v4069_v34, %v823_v3  ;;  %v28_v5 = vld [vmem:[%s4959_s3 + $0x8] sm:$0xff] }
  0x5c   :  { %3029 = vmatprep.subr.mxu0 %v3564_v0  ;;  %3056 = vmatprep.subr.mxu1 %v3564_v0  ;;  %v809_v43 = vand.u32 4294901760, %v4043_v22  ;;  %v858_v4 = vand.u32 4294901760, %v4148_v56 }
  0x5d   :  { %3030 = vmatpush3.msra.mxu0 %v231_v37  ;;  %3057 = vmatpush3.msra.mxu1 %v3677_v25  ;;  %v802_v25 = vand.u32 4294901760, %v4023_v17 }
  0x5e   :  { %3031 = vmatprep.subr.mxu0 %v3564_v0  ;;  %3058 = vmatprep.subr.mxu1 %v3564_v0 }
  0x5f   :  { %3032 = vmatpush3.msra.mxu0 %v238_v44  ;;  %3059 = vmatpush3.msra.mxu1 %v3684_v28  ;;  %v4057_v28 = vsub.f32 %v39_v12, %v4031_v20  ;;  %v803_v46 = vsub.f32 %v4023_v17, %v802_v25  ;;  %v837_v44 = vand.u32 4294901760, %v4103_v61  ;;  %v4191_v12 = vand.u32 4294901760, %v29_v39 }
  0x60   :  { %3033 = vmatprep.subr.mxu0 %v3564_v0  ;;  %3060 = vmatprep.subr.mxu1 %v3564_v0 }
  0x61   :  { %3034 = vmatpush3.msra.mxu0 %v245_v52  ;;  %3061 = vmatpush3.msra.mxu1 %v3704_v35  ;;  %v796_v35 = vsub.f32 %v4016_v15, %v795_v24  ;;  %v816_v53 = vand.u32 4294901760, %v4057_v28  ;;  %v804_v8 = vand.u32 4294901760, %v803_v46  ;;  %v26_v52 = vld [vmem:[%s4961_s0] sm:$0x3]  ;;  %v838_v33 = vsub.f32 %v4103_v61, %v837_v44 }
  0x62   :  { %3035 = vmatprep.subr.mxu0 %v3564_v0  ;;  %3062 = vmatprep.subr.mxu1 %v3564_v0  ;;  %v4161_v7 = vand.u32 4294901760, %v26_v52  ;;  %v4209_v46 = vand.u32 4294901760, %v28_v5 }
  0x63   :  { %3036 = vmatpush3.msra.mxu0 %v252_v1  ;;  %3063 = vmatpush3.msra.mxu1 %v3725_v45  ;;  %v34_v45 = vld [vmem:[%s4959_s3 + $0x38] sm:$0xff]  ;;  %v817_v26 = vsub.f32 %v4057_v28, %v816_v53  ;;  %v839_v21 = vand.u32 4294901760, %v838_v33 }
  0x64   :  { %3037 = vmatprep.subr.mxu0 %v3564_v0  ;;  %3064 = vmatprep.subr.mxu1 %v3564_v0  ;;  %v4095_v55 = vand.u32 4294901760, %v34_v45  ;;  %v30_v1 = vld [vmem:[%s4959_s3 + $0x18] sm:$0xff]  ;;  %v4194_v18 = vsub.f32 %v26_v52, %v4161_v7  ;;  %v4231_v49 = vsub.f32 %v28_v5, %v4209_v46 }
  0x65   :  { %3038 = vmatpush3.msra.mxu0 %v259_v9  ;;  %3039 = vmatprep.mubr.msk.f32.mxu0 %vm3565_vm0, %v3564_v0  ;;  %v818_v54 = vand.u32 4294901760, %v817_v26  ;;  %v825_v9 = vand.u32 4294901760, %v824_v38  ;;  %v4176_v41 = vand.u32 4294901760, %v30_v1 }
  0x66   :  { %3065 = vmatpush3.msra.mxu1 %v3733_v48  ;;  %3040 = vmatmul.mubr.f32.vlgmr.msra.gmra.mxu0 %v3767_v62  ;;  %v4090_v48 = vand.u32 4294901760, %v35_v30  ;;  %v4129_v37 = vsub.f32 %v34_v45, %v4095_v55  ;;  %v784_v26 = vand.u32 4294901760, %v4194_v18 }
  0x67   :  { %3066 = vmatprep.subr.mxu1 %v3564_v0  ;;  %3077 = vmatprep.subr.mxu0 %v3564_v0  ;;  %v4207_v45 = vsub.f32 %v30_v1, %v4176_v41 }
  0x68   :  { %3067 = vmatpush3.msra.mxu1 %v3759_v59  ;;  %3078 = vmatpush3.msra.mxu0 %v3995_v6  ;;  %v797_v59 = vand.u32 4294901760, %v796_v35  ;;  %v4118_v19 = vsub.f32 %v35_v30, %v4090_v48  ;;  %v851_v36 = vand.u32 4294901760, %v4129_v37  ;;  %v27_v35 = vld [vmem:[%s4959_s3] sm:$0xff] }
  0x69   :  { %3068 = vmatprep.subr.mxu1 %v3564_v0  ;;  %3079 = vmatprep.subr.mxu0 %v3564_v0  ;;  %v879_v52 = vand.u32 4294901760, %v4207_v45 }
  0x6a   :  { %3069 = vmatpush3.msra.mxu1 %v3771_v63  ;;  %3080 = vmatpush3.msra.mxu0 %v3999_v10  ;;  %v810_v63 = vsub.f32 %v4043_v22, %v809_v43  ;;  %v844_v60 = vand.u32 4294901760, %v4118_v19  ;;  %v852_v27 = vsub.f32 %v4129_v37, %v851_v36 }
  0x6b   :  { %3070 = vmatprep.subr.mxu1 %v3564_v0  ;;  %3081 = vmatprep.subr.mxu0 %v3564_v0 }
  0x6c   :  { %3071 = vmatpush3.msra.mxu1 %v3789_v13  ;;  %3082 = vmatpush3.msra.mxu0 %v4018_v16  ;;  %v32_v13 = vld [vmem:[%s4959_s3 + $0x28] sm:$0xff]  ;;  %v845_v51 = vsub.f32 %v4118_v19, %v844_v60 }
  0x6d   :  { %3072 = vmatprep.subr.mxu1 %v3564_v0  ;;  %3083 = vmatprep.subr.mxu0 %v3564_v0  ;;  %v4135_v42 = vand.u32 4294901760, %v32_v13 }
  0x6e   :  { %3073 = vmatpush3.msra.mxu1 %v3801_v32  ;;  %3074 = vmatprep.mubr.msk.f32.mxu1 %vm3565_vm0, %v3564_v0  ;;  %v830_v32 = vand.u32 4294901760, %v4088_v47  ;;  %v846_v57 = vand.u32 4294901760, %v845_v51  ;;  %v893_v51 = vand.u32 4294901760, %v4231_v49 }
  0x6f   :  { %3084 = vmatpush3.msra.mxu0 %v4031_v20  ;;  %3075 = vmatmul.mubr.f32.vlgmr.msra.gmra.mxu1 %v3767_v62  ;;  %v811_v62 = vand.u32 4294901760, %v810_v63  ;;  %v4165_v14 = vsub.f32 %v32_v13, %v4135_v42  ;;  %v4218_v63 = vsub.f32 %v29_v39, %v4191_v12  ;;  %v872_v13 = vand.u32 4294901760, %v4189_v11 }
  0x70   :  { %3085 = vmatprep.subr.mxu0 %v3564_v0  ;;  %3112 = vmatprep.subr.mxu1 %v3564_v0  ;;  %v831_v58 = vsub.f32 %v4088_v47, %v830_v32 }
  0x71   :  { %3086 = vmatpush3.msra.mxu0 %v4045_v23  ;;  %3113 = vmatpush3.msra.mxu1 %v797_v59  ;;  %v865_v30 = vand.u32 4294901760, %v4165_v14  ;;  %v859_v59 = vsub.f32 %v4148_v56, %v858_v4  ;;  %v873_v1 = vsub.f32 %v4189_v11, %v872_v13  ;;  %v886_v33 = vand.u32 4294901760, %v4218_v63 }
  0x72   :  { %3087 = vmatprep.subr.mxu0 %v3564_v0  ;;  %3114 = vmatprep.subr.mxu1 %v3564_v0  ;;  %v832_v50 = vand.u32 4294901760, %v831_v58 }
  0x73   :  { %3088 = vmatpush3.msra.mxu0 %v4059_v29  ;;  %3115 = vmatpush3.msra.mxu1 %v804_v8  ;;  %v4220_v8 = vand.u32 4294901760, %v27_v35  ;;  %v866_v38 = vsub.f32 %v4165_v14, %v865_v30  ;;  %v874_v5 = vand.u32 4294901760, %v873_v1 }
  0x74   :  { %3089 = vmatprep.subr.mxu0 %v3564_v0  ;;  %3116 = vmatprep.subr.mxu1 %v3564_v0 }
  0x75   :  { %3090 = vmatpush3.msra.mxu0 %v4074_v40  ;;  %3117 = vmatpush3.msra.mxu1 %v811_v62  ;;  %v853_v62 = vand.u32 4294901760, %v852_v27  ;;  %v4238_v58 = vsub.f32 %v27_v35, %v4220_v8  ;;  %v867_v39 = vand.u32 4294901760, %v866_v38  ;;  %v887_v27 = vsub.f32 %v4218_v63, %v886_v33 }
  0x76   :  { %3091 = vmatprep.subr.mxu0 %v3564_v0  ;;  %3118 = vmatprep.subr.mxu1 %v3564_v0 }
  0x77   :  { %3092 = vmatpush3.msra.mxu0 %v4090_v48  ;;  %3119 = vmatpush3.msra.mxu1 %v818_v54  ;;  %v860_v54 = vand.u32 4294901760, %v859_v59  ;;  %v900_v35 = vand.u32 4294901760, %v4238_v58  ;;  %v894_v59 = vsub.f32 %v4231_v49, %v893_v51 }
  0x78   :  { %3093 = vmatprep.subr.mxu0 %v3564_v0  ;;  %3120 = vmatprep.subr.mxu1 %v3564_v0 }
  0x79   :  { %3094 = vmatpush3.msra.mxu0 %v4095_v55  ;;  %3121 = vmatpush3.msra.mxu1 %v825_v9  ;;  %v785_v9 = vsub.f32 %v4194_v18, %v784_v26  ;;  %v901_v38 = vsub.f32 %v4238_v58, %v900_v35 }
  0x7a   :  { %3095 = vmatprep.subr.mxu0 %v3564_v0  ;;  %3122 = vmatprep.subr.mxu1 %v3564_v0 }
  0x7b   :  { %3096 = vmatpush3.msra.mxu0 %v4123_v31  ;;  %3123 = vmatpush3.msra.mxu1 %v832_v50  ;;  %v880_v50 = vsub.f32 %v4207_v45, %v879_v52  ;;  %v902_v1 = vand.u32 4294901760, %v901_v38 }
  0x7c   :  { %3097 = vmatprep.subr.mxu0 %v3564_v0  ;;  %3124 = vmatprep.subr.mxu1 %v3564_v0 }
  0x7d   :  { %3098 = vmatpush3.msra.mxu0 %v4135_v42  ;;  %3125 = vmatpush3.msra.mxu1 %v839_v21  ;;  %v786_v21 = vand.u32 4294901760, %v785_v9  ;;  %v1342_v9 = vld [vmem:[%s4962_s2] sm:$0x3] }
  0x7e   :  { %3099 = vmatprep.subr.mxu0 %v3564_v0  ;;  %3126 = vmatprep.subr.mxu1 %v3564_v0 }
  0x7f   :  { %3100 = vmatpush3.msra.mxu0 %v4159_v2  ;;  %3127 = vmatpush3.msra.mxu1 %v846_v57  ;;  %v881_v57 = vand.u32 4294901760, %v880_v50 }
  0x80   :  { %3101 = vmatprep.subr.mxu0 %v3564_v0  ;;  %3128 = vmatprep.subr.mxu1 %v3564_v0 }
  0x81   :  { %3102 = vmatpush3.msra.mxu0 %v4176_v41  ;;  %3129 = vmatpush3.msra.mxu1 %v853_v62  ;;  %v888_v62 = vand.u32 4294901760, %v887_v27 }
  0x82   :  { %3103 = vmatprep.subr.mxu0 %v3564_v0  ;;  %3130 = vmatprep.subr.mxu1 %v3564_v0 }
  0x83   :  { %3104 = vmatpush3.msra.mxu0 %v4191_v12  ;;  %3131 = vmatpush3.msra.mxu1 %v860_v54  ;;  %v895_v54 = vand.u32 4294901760, %v894_v59  ;;  %v1345_v59 = vld [vmem:[%s4959_s3 + $0x110] sm:$0xff] }
  0x84   :  { %3105 = vmatprep.subr.mxu0 %v3564_v0  ;;  %3132 = vmatprep.subr.mxu1 %v3564_v0 }
  0x85   :  { %3106 = vmatpush3.msra.mxu0 %v4209_v46  ;;  %3133 = vmatpush3.msra.mxu1 %v867_v39 }
  0x86   :  { %3107 = vmatprep.subr.mxu0 %v3564_v0  ;;  %3134 = vmatprep.subr.mxu1 %v3564_v0 }
  0x87   :  { %3108 = vmatpush3.msra.mxu0 %v4220_v8  ;;  %3109 = vmatprep.mubr.msk.f32.mxu0 %vm3565_vm0, %v3564_v0 }
  0x88   :  { %3135 = vmatpush3.msra.mxu1 %v874_v5  ;;  %3110 = vmatmul.mubr.f32.vlgmr.msra.gmra.mxu0 %v786_v21  ;;  %v1346_v5 = vld [vmem:[%s4959_s3 + $0x118] sm:$0xff] }
  0x89   :  { %3136 = vmatprep.subr.mxu1 %v3564_v0  ;;  %3147 = vmatprep.subr.mxu0 %v3564_v0  ;;  %v4590_v38 = vand.u32 4294901760, %v1346_v5 }
  0x8a   :  { %3137 = vmatpush3.msra.mxu1 %v881_v57  ;;  %3148 = vmatpush3.msra.mxu0 %v4016_v15 }
  0x8b   :  { %3138 = vmatprep.subr.mxu1 %v3564_v0  ;;  %3149 = vmatprep.subr.mxu0 %v3564_v0 }
  0x8c   :  { %3139 = vmatpush3.msra.mxu1 %v888_v62  ;;  %3150 = vmatpush3.msra.mxu0 %v4023_v17  ;;  %v4586_v62 = vand.u32 4294901760, %v1342_v9 }
  0x8d   :  { %3140 = vmatprep.subr.mxu1 %v3564_v0  ;;  %3151 = vmatprep.subr.mxu0 %v3564_v0 }
  0x8e   :  { %3141 = vmatpush3.msra.mxu1 %v895_v54  ;;  %3152 = vmatpush3.msra.mxu0 %v4043_v22 }
  0x8f   :  { %3142 = vmatprep.subr.mxu1 %v3564_v0  ;;  %3153 = vmatprep.subr.mxu0 %v3564_v0 }
  0x90   :  { %3143 = vmatpush3.msra.mxu1 %v902_v1  ;;  %3144 = vmatprep.mubr.msk.f32.mxu1 %vm3565_vm0, %v3564_v0 }
  0x91   :  { %3154 = vmatpush3.msra.mxu0 %v4057_v28  ;;  %3145 = vmatmul.mubr.f32.vlgmr.msra.gmra.mxu1 %v4161_v7 }
  0x92   :  { %3155 = vmatprep.subr.mxu0 %v3564_v0  ;;  %3182 = vmatprep.subr.mxu1 %v3564_v0 }
  0x93   :  { %3156 = vmatpush3.msra.mxu0 %v4069_v34  ;;  %3183 = vmatpush3.msra.mxu1 %v3995_v6  ;;  %v1353_v34 = vld [vmem:[%s4959_s3 + $0x150] sm:$0xff] }
  0x94   :  { %3157 = vmatprep.subr.mxu0 %v3564_v0  ;;  %3184 = vmatprep.subr.mxu1 %v3564_v0 }
  0x95   :  { %3158 = vmatpush3.msra.mxu0 %v4088_v47  ;;  %3185 = vmatpush3.msra.mxu1 %v3999_v10 }
  0x96   :  { %3159 = vmatprep.subr.mxu0 %v3564_v0  ;;  %3186 = vmatprep.subr.mxu1 %v3564_v0 }
  0x97   :  { %3160 = vmatpush3.msra.mxu0 %v4103_v61  ;;  %3187 = vmatpush3.msra.mxu1 %v4018_v16 }
  0x98   :  { %3161 = vmatprep.subr.mxu0 %v3564_v0  ;;  %3188 = vmatprep.subr.mxu1 %v3564_v0 }
  0x99   :  { %3162 = vmatpush3.msra.mxu0 %v4118_v19  ;;  %3189 = vmatpush3.msra.mxu1 %v4031_v20 }
  0x9a   :  { %3163 = vmatprep.subr.mxu0 %v3564_v0  ;;  %3190 = vmatprep.subr.mxu1 %v3564_v0 }
  0x9b   :  { %3164 = vmatpush3.msra.mxu0 %v4129_v37  ;;  %3191 = vmatpush3.msra.mxu1 %v4045_v23 }
  0x9c   :  { %3165 = vmatprep.subr.mxu0 %v3564_v0  ;;  %3192 = vmatprep.subr.mxu1 %v3564_v0 }
  0x9d   :  { %3166 = vmatpush3.msra.mxu0 %v4148_v56  ;;  %3193 = vmatpush3.msra.mxu1 %v4059_v29 }
  0x9e   :  { %3167 = vmatprep.subr.mxu0 %v3564_v0  ;;  %3194 = vmatprep.subr.mxu1 %v3564_v0 }
  0x9f   :  { %3168 = vmatpush3.msra.mxu0 %v4165_v14  ;;  %3195 = vmatpush3.msra.mxu1 %v4074_v40  ;;  %v1349_v14 = vld [vmem:[%s4959_s3 + $0x130] sm:$0xff] }
  0xa0   :  { %3169 = vmatprep.subr.mxu0 %v3564_v0  ;;  %3196 = vmatprep.subr.mxu1 %v3564_v0 }
  0xa1   :  { %3170 = vmatpush3.msra.mxu0 %v4189_v11  ;;  %3197 = vmatpush3.msra.mxu1 %v4090_v48 }
  0xa2   :  { %3171 = vmatprep.subr.mxu0 %v3564_v0  ;;  %3198 = vmatprep.subr.mxu1 %v3564_v0 }
  0xa3   :  { %3172 = vmatpush3.msra.mxu0 %v4207_v45  ;;  %3199 = vmatpush3.msra.mxu1 %v4095_v55 }
  0xa4   :  { %3173 = vmatprep.subr.mxu0 %v3564_v0  ;;  %3200 = vmatprep.subr.mxu1 %v3564_v0 }
  0xa5   :  { %3174 = vmatpush3.msra.mxu0 %v4218_v63  ;;  %3201 = vmatpush3.msra.mxu1 %v4123_v31 }
  0xa6   :  { %3175 = vmatprep.subr.mxu0 %v3564_v0  ;;  %3202 = vmatprep.subr.mxu1 %v3564_v0 }
  0xa7   :  { %3176 = vmatpush3.msra.mxu0 %v4231_v49  ;;  %3203 = vmatpush3.msra.mxu1 %v4135_v42 }
  0xa8   :  { %3177 = vmatprep.subr.mxu0 %v3564_v0  ;;  %3204 = vmatprep.subr.mxu1 %v3564_v0 }
  0xa9   :  { %3178 = vmatpush3.msra.mxu0 %v4238_v58  ;;  %3179 = vmatprep.mubr.msk.f32.mxu0 %vm3565_vm0, %v3564_v0 }
  0xaa   :  { %3205 = vmatpush3.msra.mxu1 %v4159_v2  ;;  %3180 = vmatmul.mubr.f32.vlgmr.msra.gmra.mxu0 %v4194_v18  ;;  %v1348_v18 = vld [vmem:[%s4959_s3 + $0x128] sm:$0xff] }
  0xab   :  { %3206 = vmatprep.subr.mxu1 %v3564_v0  ;;  %3217 = vmatprep.subr.mxu0 %v3564_v0  ;;  %v4552_v49 = vand.u32 4294901760, %v1348_v18 }
  0xac   :  { %3207 = vmatpush3.msra.mxu1 %v4176_v41  ;;  %3218 = vmatpush3.msra.mxu0 %v795_v24  ;;  %v1354_v24 = vld [vmem:[%s4959_s3 + $0x158] sm:$0xff] }
  0xad   :  { %3208 = vmatprep.subr.mxu1 %v3564_v0  ;;  %3219 = vmatprep.subr.mxu0 %v3564_v0  ;;  %v4577_v27 = vsub.f32 %v1348_v18, %v4552_v49 }
  0xae   :  { %3209 = vmatpush3.msra.mxu1 %v4191_v12  ;;  %3220 = vmatpush3.msra.mxu0 %v802_v25 }
  0xaf   :  { %3210 = vmatprep.subr.mxu1 %v3564_v0  ;;  %3221 = vmatprep.subr.mxu0 %v3564_v0 }
  0xb0   :  { %3211 = vmatpush3.msra.mxu1 %v4209_v46  ;;  %3222 = vmatpush3.msra.mxu0 %v809_v43 }
  0xb1   :  { %3212 = vmatprep.subr.mxu1 %v3564_v0  ;;  %3223 = vmatprep.subr.mxu0 %v3564_v0 }
  0xb2   :  { %3213 = vmatpush3.msra.mxu1 %v4220_v8  ;;  %3214 = vmatprep.mubr.msk.f32.mxu1 %vm3565_vm0, %v3564_v0 }
  0xb3   :  { %3224 = vmatpush3.msra.mxu0 %v816_v53  ;;  %3215 = vmatmul.mubr.f32.vlgmr.msra.gmra.mxu1 %v784_v26  ;;  %v4472_v53 = vand.u32 4294901760, %v1353_v34 }
  0xb4   :  { %3225 = vmatprep.subr.mxu0 %v3564_v0  ;;  %3252 = vmatprep.subr.mxu1 %v3564_v0 }
  0xb5   :  { %3226 = vmatpush3.msra.mxu0 %v823_v3  ;;  %3253 = vmatpush3.msra.mxu1 %v3995_v6  ;;  %v1358_v6 = vld [vmem:[%s4959_s3 + $0x178] sm:$0xff]  ;;  %v1351_v3 = vld [vmem:[%s4959_s3 + $0x140] sm:$0xff] }
  0xb6   :  { %3227 = vmatprep.subr.mxu0 %v3564_v0  ;;  %3254 = vmatprep.subr.mxu1 %v3564_v0  ;;  %v4409_v15 = vand.u32 4294901760, %v1358_v6 }
  0xb7   :  { %3228 = vmatpush3.msra.mxu0 %v830_v32  ;;  %3255 = vmatpush3.msra.mxu1 %v3999_v10  ;;  %v1357_v10 = vld [vmem:[%s4959_s3 + $0x170] sm:$0xff] }
  0xb8   :  { %3229 = vmatprep.subr.mxu0 %v3564_v0  ;;  %3256 = vmatprep.subr.mxu1 %v3564_v0  ;;  %v4419_v17 = vand.u32 4294901760, %v1357_v10  ;;  %v4430_v22 = vsub.f32 %v1358_v6, %v4409_v15 }
  0xb9   :  { %3230 = vmatpush3.msra.mxu0 %v837_v44  ;;  %3257 = vmatpush3.msra.mxu1 %v4018_v16  ;;  %v1356_v16 = vld [vmem:[%s4959_s3 + $0x168] sm:$0xff]  ;;  %v4500_v44 = vsub.f32 %v1353_v34, %v4472_v53 }
  0xba   :  { %3231 = vmatprep.subr.mxu0 %v3564_v0  ;;  %3258 = vmatprep.subr.mxu1 %v3564_v0  ;;  %v4445_v28 = vsub.f32 %v1357_v10, %v4419_v17  ;;  %v1453_v43 = vand.u32 4294901760, %v4430_v22 }
  0xbb   :  { %3232 = vmatpush3.msra.mxu0 %v844_v60  ;;  %3259 = vmatpush3.msra.mxu1 %v4031_v20  ;;  %v1355_v20 = vld [vmem:[%s4959_s3 + $0x160] sm:$0xff]  ;;  %v4505_v60 = vand.u32 4294901760, %v1351_v3  ;;  %v1488_v63 = vand.u32 4294901760, %v4500_v44 }
  0xbc   :  { %3233 = vmatprep.subr.mxu0 %v3564_v0  ;;  %3260 = vmatprep.subr.mxu1 %v3564_v0  ;;  %v4439_v25 = vand.u32 4294901760, %v1355_v20  ;;  %v1454_v19 = vsub.f32 %v4430_v22, %v1453_v43 }
  0xbd   :  { %3234 = vmatpush3.msra.mxu0 %v851_v36  ;;  %3261 = vmatpush3.msra.mxu1 %v4045_v23  ;;  %v4432_v23 = vand.u32 4294901760, %v1356_v16  ;;  %v4535_v45 = vsub.f32 %v1351_v3, %v4505_v60  ;;  %v1489_v39 = vsub.f32 %v4500_v44, %v1488_v63  ;;  %v1343_v3 = vld [vmem:[%s4959_s3 + $0x100] sm:$0xff] }
  0xbe   :  { %3235 = vmatprep.subr.mxu0 %v3564_v0  ;;  %3262 = vmatprep.subr.mxu1 %v3564_v0  ;;  %v4465_v47 = vsub.f32 %v1355_v20, %v4439_v25  ;;  %v1455_v36 = vand.u32 4294901760, %v1454_v19  ;;  %v4605_v20 = vand.u32 4294901760, %v1345_v59  ;;  %v4616_v19 = vsub.f32 %v1342_v9, %v4586_v62 }
  0xbf   :  { %3236 = vmatpush3.msra.mxu0 %v858_v4  ;;  %3263 = vmatpush3.msra.mxu1 %v4059_v29  ;;  %v4449_v29 = vand.u32 4294901760, %v1354_v24  ;;  %v1490_v54 = vand.u32 4294901760, %v1489_v39  ;;  %v4635_v18 = vand.u32 4294901760, %v1343_v3 }
  0xc0   :  { %3237 = vmatprep.subr.mxu0 %v3564_v0  ;;  %3264 = vmatprep.subr.mxu1 %v3564_v0  ;;  %v1474_v37 = vand.u32 4294901760, %v4465_v47 }
  0xc1   :  { %3238 = vmatpush3.msra.mxu0 %v865_v30  ;;  %3265 = vmatpush3.msra.mxu1 %v4074_v40  ;;  %v4459_v40 = vsub.f32 %v1356_v16, %v4432_v23  ;;  %v4478_v61 = vsub.f32 %v1354_v24, %v4449_v29  ;;  %v1344_v16 = vld [vmem:[%s4959_s3 + $0x108] sm:$0xff] }
  0xc2   :  { %3239 = vmatprep.subr.mxu0 %v3564_v0  ;;  %3266 = vmatprep.subr.mxu1 %v3564_v0 }
  0xc3   :  { %3240 = vmatpush3.msra.mxu0 %v872_v13  ;;  %3267 = vmatpush3.msra.mxu1 %v4090_v48  ;;  %v1352_v48 = vld [vmem:[%s4959_s3 + $0x148] sm:$0xff]  ;;  %v1467_v32 = vand.u32 4294901760, %v4459_v40 }
  0xc4   :  { %3241 = vmatprep.subr.mxu0 %v3564_v0  ;;  %3268 = vmatprep.subr.mxu1 %v3564_v0 }
  0xc5   :  { %3242 = vmatpush3.msra.mxu0 %v879_v52  ;;  %3269 = vmatpush3.msra.mxu1 %v4095_v55  ;;  %v1460_v55 = vand.u32 4294901760, %v4445_v28  ;;  %v1468_v4 = vsub.f32 %v4459_v40, %v1467_v32 }
  0xc6   :  { %3243 = vmatprep.subr.mxu0 %v3564_v0  ;;  %3270 = vmatprep.subr.mxu1 %v3564_v0 }
  0xc7   :  { %3244 = vmatpush3.msra.mxu0 %v886_v33  ;;  %3271 = vmatpush3.msra.mxu1 %v4123_v31  ;;  %v4488_v31 = vand.u32 4294901760, %v1352_v48  ;;  %v1461_v56 = vsub.f32 %v4445_v28, %v1460_v55  ;;  %v1469_v13 = vand.u32 4294901760, %v1468_v4 }
  0xc8   :  { %3245 = vmatprep.subr.mxu0 %v3564_v0  ;;  %3272 = vmatprep.subr.mxu1 %v3564_v0 }
  0xc9   :  { %3246 = vmatpush3.msra.mxu0 %v893_v51  ;;  %3273 = vmatpush3.msra.mxu1 %v4135_v42  ;;  %v1350_v42 = vld [vmem:[%s4959_s3 + $0x138] sm:$0xff]  ;;  %v1462_v30 = vand.u32 4294901760, %v1461_v56  ;;  %v1502_v51 = vand.u32 4294901760, %v4535_v45  ;;  %v4623_v56 = vand.u32 4294901760, %v1344_v16 }
  0xca   :  { %3247 = vmatprep.subr.mxu0 %v3564_v0  ;;  %3274 = vmatprep.subr.mxu1 %v3564_v0  ;;  %v4521_v11 = vand.u32 4294901760, %v1350_v42 }
  0xcb   :  { %3248 = vmatpush3.msra.mxu0 %v900_v35  ;;  %3249 = vmatprep.mubr.msk.f32.mxu0 %vm3565_vm0, %v3564_v0  ;;  %v1503_v6 = vsub.f32 %v4535_v45, %v1502_v51 }
  0xcc   :  { %3275 = vmatpush3.msra.mxu1 %v4159_v2  ;;  %3250 = vmatmul.mubr.f32.vlgmr.msra.gmra.mxu0 %v4161_v7  ;;  %v1481_v2 = vand.u32 4294901760, %v4478_v61  ;;  %v4550_v26 = vsub.f32 %v1350_v42, %v4521_v11  ;;  %v4621_v42 = vsub.f32 %v1346_v5, %v4590_v38 }
  0xcd   :  { %3276 = vmatprep.subr.mxu1 %v3564_v0  ;;  %3287 = vmatprep.subr.mxu0 %v3564_v0 }
  0xce   :  { %3277 = vmatpush3.msra.mxu1 %v4176_v41  ;;  %3288 = vmatpush3.msra.mxu0 %v4409_v15  ;;  %v4516_v41 = vsub.f32 %v1352_v48, %v4488_v31  ;;  %v1509_v57 = vand.u32 4294901760, %v4550_v26  ;;  %v1523_v48 = vand.u32 4294901760, %v4577_v27 }
  0xcf   :  { %3278 = vmatprep.subr.mxu1 %v3564_v0  ;;  %3289 = vmatprep.subr.mxu0 %v3564_v0 }
  0xd0   :  { %3279 = vmatpush3.msra.mxu1 %v4191_v12  ;;  %3290 = vmatpush3.msra.mxu0 %v4419_v17  ;;  %v1475_v12 = vsub.f32 %v4465_v47, %v1474_v37  ;;  %v1495_v52 = vand.u32 4294901760, %v4516_v41  ;;  %v1510_v34 = vsub.f32 %v4550_v26, %v1509_v57 }
  0xd1   :  { %3280 = vmatprep.subr.mxu1 %v3564_v0  ;;  %3291 = vmatprep.subr.mxu0 %v3564_v0 }
  0xd2   :  { %3281 = vmatpush3.msra.mxu1 %v4209_v46  ;;  %3292 = vmatpush3.msra.mxu0 %v4432_v23  ;;  %v4537_v46 = vand.u32 4294901760, %v1349_v14  ;;  %v1476_v58 = vand.u32 4294901760, %v1475_v12  ;;  %v1496_v35 = vsub.f32 %v4516_v41, %v1495_v52  ;;  %v4633_v12 = vsub.f32 %v1345_v59, %v4605_v20 }
  0xd3   :  { %3282 = vmatprep.subr.mxu1 %v3564_v0  ;;  %3293 = vmatprep.subr.mxu0 %v3564_v0 }
  0xd4   :  { %3283 = vmatpush3.msra.mxu1 %v4220_v8  ;;  %3284 = vmatprep.mubr.msk.f32.mxu1 %vm3565_vm0, %v3564_v0  ;;  %v1482_v8 = vsub.f32 %v4478_v61, %v1481_v2  ;;  %v4562_v33 = vsub.f32 %v1349_v14, %v4537_v46  ;;  %v1497_v24 = vand.u32 4294901760, %v1496_v35  ;;  %v1504_v14 = vand.u32 4294901760, %v1503_v6 }
  0xd5   :  { %3294 = vmatpush3.msra.mxu0 %v4439_v25  ;;  %3285 = vmatmul.mubr.f32.vlgmr.msra.gmra.mxu1 %v4161_v7  ;;  %v1347_v7 = vld [vmem:[%s4959_s3 + $0x120] sm:$0xff]  ;;  %v1544_v35 = vand.u32 4294901760, %v4633_v12 }
  0xd6   :  { %3295 = vmatprep.subr.mxu0 %v3564_v0  ;;  %3322 = vmatprep.subr.mxu1 %v3564_v0  ;;  %v4567_v50 = vand.u32 4294901760, %v1347_v7  ;;  %v1483_v21 = vand.u32 4294901760, %v1482_v8  ;;  %v1516_v10 = vand.u32 4294901760, %v4562_v33  ;;  %v1524_v8 = vsub.f32 %v4577_v27, %v1523_v48 }
  0xd7   :  { %3296 = vmatpush3.msra.mxu0 %v4449_v29  ;;  %3323 = vmatpush3.msra.mxu1 %v1455_v36 }
  0xd8   :  { %3297 = vmatprep.subr.mxu0 %v3564_v0  ;;  %3324 = vmatprep.subr.mxu1 %v3564_v0  ;;  %v4594_v1 = vsub.f32 %v1347_v7, %v4567_v50  ;;  %v1517_v36 = vsub.f32 %v4562_v33, %v1516_v10  ;;  %v1442_v7 = vand.u32 4294901760, %v4616_v19 }
  0xd9   :  { %3298 = vmatpush3.msra.mxu0 %v4472_v53  ;;  %3325 = vmatpush3.msra.mxu1 %v1462_v30  ;;  %v1511_v30 = vand.u32 4294901760, %v1510_v34 }
  0xda   :  { %3299 = vmatprep.subr.mxu0 %v3564_v0  ;;  %3326 = vmatprep.subr.mxu1 %v3564_v0  ;;  %v1530_v4 = vand.u32 4294901760, %v4594_v1  ;;  %v1518_v39 = vand.u32 4294901760, %v1517_v36  ;;  %v1443_v6 = vsub.f32 %v4616_v19, %v1442_v7 }
  0xdb   :  { %3300 = vmatpush3.msra.mxu0 %v4488_v31  ;;  %3327 = vmatpush3.msra.mxu1 %v1469_v13  ;;  %v4645_v13 = vsub.f32 %v1344_v16, %v4623_v56 }
  0xdc   :  { %3301 = vmatprep.subr.mxu0 %v3564_v0  ;;  %3328 = vmatprep.subr.mxu1 %v3564_v0  ;;  %v1531_v5 = vsub.f32 %v4594_v1, %v1530_v4  ;;  %v1444_v36 = vand.u32 4294901760, %v1443_v6 }
  0xdd   :  { %3302 = vmatpush3.msra.mxu0 %v4505_v60  ;;  %3329 = vmatpush3.msra.mxu1 %v1476_v58  ;;  %v1537_v58 = vand.u32 4294901760, %v4621_v42 }
  0xde   :  { %3303 = vmatprep.subr.mxu0 %v3564_v0  ;;  %3330 = vmatprep.subr.mxu1 %v3564_v0  ;;  %v1532_v34 = vand.u32 4294901760, %v1531_v5 }
  0xdf   :  { %3304 = vmatpush3.msra.mxu0 %v4521_v11  ;;  %3331 = vmatpush3.msra.mxu1 %v1483_v21  ;;  %v4655_v21 = vsub.f32 %v1343_v3, %v4635_v18  ;;  %v1538_v16 = vsub.f32 %v4621_v42, %v1537_v58  ;;  %v1545_v3 = vsub.f32 %v4633_v12, %v1544_v35 }
  0xe0   :  { %3305 = vmatprep.subr.mxu0 %v3564_v0  ;;  %3332 = vmatprep.subr.mxu1 %v3564_v0 }
  0xe1   :  { %3306 = vmatpush3.msra.mxu0 %v4537_v46  ;;  %3333 = vmatpush3.msra.mxu1 %v1490_v54  ;;  %v1525_v54 = vand.u32 4294901760, %v1524_v8  ;;  %v1539_v8 = vand.u32 4294901760, %v1538_v16 }
  0xe2   :  { %3307 = vmatprep.subr.mxu0 %v3564_v0  ;;  %3334 = vmatprep.subr.mxu1 %v3564_v0 }
  0xe3   :  { %3308 = vmatpush3.msra.mxu0 %v4552_v49  ;;  %3335 = vmatpush3.msra.mxu1 %v1497_v24  ;;  %v1551_v24 = vand.u32 4294901760, %v4645_v13 }
  0xe4   :  { %3309 = vmatprep.subr.mxu0 %v3564_v0  ;;  %3336 = vmatprep.subr.mxu1 %v3564_v0  ;;  %v147_v9 = vpop.f32.mrf.mxu0 }
  0xe5   :  { %3310 = vmatpush3.msra.mxu0 %v4567_v50  ;;  %3337 = vmatpush3.msra.mxu1 %v1504_v14  ;;  %v1558_v14 = vand.u32 4294901760, %v4655_v21 }
  0xe6   :  { %3311 = vmatprep.subr.mxu0 %v3564_v0  ;;  %3338 = vmatprep.subr.mxu1 %v3564_v0  ;;  %v2901_v59 = vpop.f32.mrf.mxu0 }
  0xe7   :  { %3312 = vmatpush3.msra.mxu0 %v4590_v38  ;;  %3339 = vmatpush3.msra.mxu1 %v1511_v30  ;;  %v1559_v6 = vsub.f32 %v4655_v21, %v1558_v14 }
  0xe8   :  { %3313 = vmatprep.subr.mxu0 %v3564_v0  ;;  %3340 = vmatprep.subr.mxu1 %v3564_v0 }
  0xe9   :  { %3314 = vmatpush3.msra.mxu0 %v4605_v20  ;;  %3341 = vmatpush3.msra.mxu1 %v1518_v39  ;;  %v1552_v39 = vsub.f32 %v4645_v13, %v1551_v24  ;;  %v1560_v16 = vand.u32 4294901760, %v1559_v6 }
  0xea   :  { %3315 = vmatprep.subr.mxu0 %v3564_v0  ;;  %3342 = vmatprep.subr.mxu1 %v3564_v0 }
  0xeb   :  { %3316 = vmatpush3.msra.mxu0 %v4623_v56  ;;  %3343 = vmatpush3.msra.mxu1 %v1525_v54  ;;  %v298_v30 = vpop.f32.mrf.mxu1  ;;  %v1546_v54 = vand.u32 4294901760, %v1545_v3 }
  0xec   :  { %3317 = vmatprep.subr.mxu0 %v3564_v0  ;;  %3344 = vmatprep.subr.mxu1 %v3564_v0  ;;  %v299_v5 = vadd.f32 %v298_v30, %v147_v9  ;;  %v1553_v9 = vand.u32 4294901760, %v1552_v39 }
  0xed   :  { %3318 = vmatpush3.msra.mxu0 %v4635_v18  ;;  %3345 = vmatpush3.msra.mxu1 %v1532_v34  ;;  %v2936_v59 = vpop.f32.mrf.mxu1 }
  0xee   :  { %3319 = vmatprep.mubr.msk.f32.mxu0 %vm3565_vm0, %v3564_v0  ;;  %3346 = vmatprep.subr.mxu1 %v3564_v0 }
  0xef   :  { %3357 = vmatprep.subr.mxu0 %v3564_v0  ;;  %3320 = vmatmul.mubr.f32.vlgmr.msra.gmra.mxu0 %v1444_v36 }
  0xf0   :  { %3347 = vmatpush3.msra.mxu1 %v1539_v8  ;;  %3358 = vmatpush3.msra.mxu0 %v4430_v22 }
  0xf1   :  { %3348 = vmatprep.subr.mxu1 %v3564_v0  ;;  %3359 = vmatprep.subr.mxu0 %v3564_v0 }
  0xf2   :  { %3349 = vmatpush3.msra.mxu1 %v1546_v54  ;;  %3360 = vmatpush3.msra.mxu0 %v4445_v28 }
  0xf3   :  { %3350 = vmatprep.subr.mxu1 %v3564_v0  ;;  %3361 = vmatprep.subr.mxu0 %v3564_v0 }
  0xf4   :  { %3351 = vmatpush3.msra.mxu1 %v1553_v9  ;;  %3362 = vmatpush3.msra.mxu0 %v4459_v40 }
  0xf5   :  { %3352 = vmatprep.subr.mxu1 %v3564_v0  ;;  %3363 = vmatprep.subr.mxu0 %v3564_v0 }
  0xf6   :  { %3353 = vmatpush3.msra.mxu1 %v1560_v16  ;;  %3354 = vmatprep.mubr.msk.f32.mxu1 %vm3565_vm0, %v3564_v0 }
  0xf7   :  { %3364 = vmatpush3.msra.mxu0 %v4465_v47  ;;  %3355 = vmatmul.mubr.f32.vlgmr.msra.gmra.mxu1 %v4586_v62 }
  0xf8   :  { %3365 = vmatprep.subr.mxu0 %v3564_v0  ;;  %3392 = vmatprep.subr.mxu1 %v3564_v0 }
  0xf9   :  { %3366 = vmatpush3.msra.mxu0 %v4478_v61  ;;  %3393 = vmatpush3.msra.mxu1 %v4409_v15 }
  0xfa   :  { %3367 = vmatprep.subr.mxu0 %v3564_v0  ;;  %3394 = vmatprep.subr.mxu1 %v3564_v0 }
  0xfb   :  { %3368 = vmatpush3.msra.mxu0 %v4500_v44  ;;  %3395 = vmatpush3.msra.mxu1 %v4419_v17 }
  0xfc   :  { %3369 = vmatprep.subr.mxu0 %v3564_v0  ;;  %3396 = vmatprep.subr.mxu1 %v3564_v0 }
  0xfd   :  { %3370 = vmatpush3.msra.mxu0 %v4516_v41  ;;  %3397 = vmatpush3.msra.mxu1 %v4432_v23 }
  0xfe   :  { %3371 = vmatprep.subr.mxu0 %v3564_v0  ;;  %3398 = vmatprep.subr.mxu1 %v3564_v0 }
  0xff   :  { %3372 = vmatpush3.msra.mxu0 %v4535_v45  ;;  %3399 = vmatpush3.msra.mxu1 %v4439_v25 }
 0x100   :  { %3373 = vmatprep.subr.mxu0 %v3564_v0  ;;  %3400 = vmatprep.subr.mxu1 %v3564_v0 }
 0x101   :  { %3374 = vmatpush3.msra.mxu0 %v4550_v26  ;;  %3401 = vmatpush3.msra.mxu1 %v4449_v29 }
 0x102   :  { %3375 = vmatprep.subr.mxu0 %v3564_v0  ;;  %3402 = vmatprep.subr.mxu1 %v3564_v0 }
 0x103   :  { %3376 = vmatpush3.msra.mxu0 %v4562_v33  ;;  %3403 = vmatpush3.msra.mxu1 %v4472_v53 }
 0x104   :  { %3377 = vmatprep.subr.mxu0 %v3564_v0  ;;  %3404 = vmatprep.subr.mxu1 %v3564_v0  ;;  %v402_v34 = vpop.f32.mrf.mxu0 }
 0x105   :  { %3378 = vmatpush3.msra.mxu0 %v4577_v27  ;;  %3405 = vmatpush3.msra.mxu1 %v4488_v31  ;;  %v403_v3 = vadd.f32 %v402_v34, %v299_v5 }
 0x106   :  { %3379 = vmatprep.subr.mxu0 %v3564_v0  ;;  %3406 = vmatprep.subr.mxu1 %v3564_v0  ;;  %v2971_v36 = vpop.f32.mrf.mxu0 }
 0x107   :  { %3380 = vmatpush3.msra.mxu0 %v4594_v1  ;;  %3407 = vmatpush3.msra.mxu1 %v4505_v60 }
 0x108   :  { %3381 = vmatprep.subr.mxu0 %v3564_v0  ;;  %3408 = vmatprep.subr.mxu1 %v3564_v0 }
 0x109   :  { %3382 = vmatpush3.msra.mxu0 %v4621_v42  ;;  %3409 = vmatpush3.msra.mxu1 %v4521_v11 }
 0x10a   :  { %3383 = vmatprep.subr.mxu0 %v3564_v0  ;;  %3410 = vmatprep.subr.mxu1 %v3564_v0 }
 0x10b   :  { %3384 = vmatpush3.msra.mxu0 %v4633_v12  ;;  %3411 = vmatpush3.msra.mxu1 %v4537_v46 }
 0x10c   :  { %3385 = vmatprep.subr.mxu0 %v3564_v0  ;;  %3412 = vmatprep.subr.mxu1 %v3564_v0 }
 0x10d   :  { %3386 = vmatpush3.msra.mxu0 %v4645_v13  ;;  %3413 = vmatpush3.msra.mxu1 %v4552_v49  ;;  %v491_v30 = vpop.f32.mrf.mxu1 }
 0x10e   :  { %3387 = vmatprep.subr.mxu0 %v3564_v0  ;;  %3414 = vmatprep.subr.mxu1 %v3564_v0  ;;  %v492_v8 = vadd.f32 %v491_v30, %v403_v3  ;;  %v2535_v3 = vld [vmem:[%s4964_s4] ss:$0 sm:$0xff] }
 0x10f   :  { %3388 = vmatpush3.msra.mxu0 %v4655_v21  ;;  %3389 = vmatprep.mubr.msk.f32.mxu0 %vm3565_vm0, %v3564_v0  ;;  %v3006_v39 = vpop.f32.mrf.mxu1 }
 0x110   :  { %3415 = vmatpush3.msra.mxu1 %v4567_v50  ;;  %3390 = vmatmul.mubr.f32.vlgmr.msra.gmra.mxu0 %v4616_v19 }
 0x111   :  { %3416 = vmatprep.subr.mxu1 %v3564_v0  ;;  %3427 = vmatprep.subr.mxu0 %v3564_v0 }
 0x112   :  { %3417 = vmatpush3.msra.mxu1 %v4590_v38  ;;  %3428 = vmatpush3.msra.mxu0 %v1453_v43 }
 0x113   :  { %3418 = vmatprep.subr.mxu1 %v3564_v0  ;;  %3429 = vmatprep.subr.mxu0 %v3564_v0 }
 0x114   :  { %3419 = vmatpush3.msra.mxu1 %v4605_v20  ;;  %3430 = vmatpush3.msra.mxu0 %v1460_v55 }
 0x115   :  { %3420 = vmatprep.subr.mxu1 %v3564_v0  ;;  %3431 = vmatprep.subr.mxu0 %v3564_v0 }
 0x116   :  { %3421 = vmatpush3.msra.mxu1 %v4623_v56  ;;  %3432 = vmatpush3.msra.mxu0 %v1467_v32 }
 0x117   :  { %3422 = vmatprep.subr.mxu1 %v3564_v0  ;;  %3433 = vmatprep.subr.mxu0 %v3564_v0 }
 0x118   :  { %3423 = vmatpush3.msra.mxu1 %v4635_v18  ;;  %3424 = vmatprep.mubr.msk.f32.mxu1 %vm3565_vm0, %v3564_v0 }
 0x119   :  { %3434 = vmatpush3.msra.mxu0 %v1474_v37  ;;  %3425 = vmatmul.mubr.f32.vlgmr.msra.gmra.mxu1 %v1442_v7 }
 0x11a   :  { %3435 = vmatprep.subr.mxu0 %v3564_v0  ;;  %3462 = vmatprep.subr.mxu1 %v3564_v0 }
 0x11b   :  { %3436 = vmatpush3.msra.mxu0 %v1481_v2  ;;  %3463 = vmatpush3.msra.mxu1 %v4409_v15  ;;  %v2014_v2 = vld [vmem:[%s4963_s5 + $0x10] sm:$0xff] }
 0x11c   :  { %3437 = vmatprep.subr.mxu0 %v3564_v0  ;;  %3464 = vmatprep.subr.mxu1 %v3564_v0  ;;  %v4860_v41 = vand.u32 4294901760, %v2014_v2 }
 0x11d   :  { %3438 = vmatpush3.msra.mxu0 %v1488_v63  ;;  %3465 = vmatpush3.msra.mxu1 %v4419_v17  ;;  %v2012_v63 = vld [vmem:[%s4963_s5] sm:$0xff] }
 0x11e   :  { %3439 = vmatprep.subr.mxu0 %v3564_v0  ;;  %3466 = vmatprep.subr.mxu1 %v3564_v0  ;;  %v4866_v45 = vsub.f32 %v2014_v2, %v4860_v41 }
 0x11f   :  { %3440 = vmatpush3.msra.mxu0 %v1495_v52  ;;  %3467 = vmatpush3.msra.mxu1 %v4432_v23  ;;  %v4879_v52 = vand.u32 4294901760, %v2012_v63 }
 0x120   :  { %3441 = vmatprep.subr.mxu0 %v3564_v0  ;;  %3468 = vmatprep.subr.mxu1 %v3564_v0  ;;  %v2133_v26 = vand.u32 4294901760, %v4866_v45 }
 0x121   :  { %3442 = vmatpush3.msra.mxu0 %v1502_v51  ;;  %3469 = vmatpush3.msra.mxu1 %v4439_v25  ;;  %v4888_v51 = vsub.f32 %v2012_v63, %v4879_v52 }
 0x122   :  { %3443 = vmatprep.subr.mxu0 %v3564_v0  ;;  %3470 = vmatprep.subr.mxu1 %v3564_v0  ;;  %v2134_v33 = vsub.f32 %v4866_v45, %v2133_v26 }
 0x123   :  { %3444 = vmatpush3.msra.mxu0 %v1509_v57  ;;  %3471 = vmatpush3.msra.mxu1 %v4449_v29 }
 0x124   :  { %3445 = vmatprep.subr.mxu0 %v3564_v0  ;;  %3472 = vmatprep.subr.mxu1 %v3564_v0  ;;  %v2135_v27 = vand.u32 4294901760, %v2134_v33 }
 0x125   :  { %3446 = vmatpush3.msra.mxu0 %v1516_v10  ;;  %3473 = vmatpush3.msra.mxu1 %v4472_v53 }
 0x126   :  { %3447 = vmatprep.subr.mxu0 %v3564_v0  ;;  %3474 = vmatprep.subr.mxu1 %v3564_v0  ;;  %v610_v15 = vpop.f32.mrf.mxu0 }
 0x127   :  { %3448 = vmatpush3.msra.mxu0 %v1523_v48  ;;  %3475 = vmatpush3.msra.mxu1 %v4488_v31  ;;  %v611_v17 = vadd.f32 %v610_v15, %v492_v8 }
 0x128   :  { %3449 = vmatprep.subr.mxu0 %v3564_v0  ;;  %3476 = vmatprep.subr.mxu1 %v3564_v0  ;;  %v3041_v22 = vpop.f32.mrf.mxu0 }
 0x129   :  { %3450 = vmatpush3.msra.mxu0 %v1530_v4  ;;  %3477 = vmatpush3.msra.mxu1 %v4505_v60 }
 0x12a   :  { %3451 = vmatprep.subr.mxu0 %v3564_v0  ;;  %3478 = vmatprep.subr.mxu1 %v3564_v0 }
 0x12b   :  { %3452 = vmatpush3.msra.mxu0 %v1537_v58  ;;  %3479 = vmatpush3.msra.mxu1 %v4521_v11  ;;  %v2013_v11 = vld [vmem:[%s4963_s5 + $0x8] sm:$0xff] }
 0x12c   :  { %3453 = vmatprep.subr.mxu0 %v3564_v0  ;;  %3480 = vmatprep.subr.mxu1 %v3564_v0 }
 0x12d   :  { %3454 = vmatpush3.msra.mxu0 %v1544_v35  ;;  %3481 = vmatpush3.msra.mxu1 %v4537_v46  ;;  %v4868_v46 = vand.u32 4294901760, %v2013_v11 }
 0x12e   :  { %3455 = vmatprep.subr.mxu0 %v3564_v0  ;;  %3482 = vmatprep.subr.mxu1 %v3564_v0 }
 0x12f   :  { %3456 = vmatpush3.msra.mxu0 %v1551_v24  ;;  %3483 = vmatpush3.msra.mxu1 %v4552_v49  ;;  %v697_v23 = vpop.f32.mrf.mxu1  ;;  %v4877_v49 = vsub.f32 %v2013_v11, %v4868_v46 }
 0x130   :  { %3457 = vmatprep.subr.mxu0 %v3564_v0  ;;  %3484 = vmatprep.subr.mxu1 %v3564_v0  ;;  %v698_v25 = vadd.f32 %v697_v23, %v611_v17 }
 0x131   :  { %3458 = vmatpush3.msra.mxu0 %v1558_v14  ;;  %3459 = vmatprep.mubr.msk.f32.mxu0 %vm3565_vm0, %v3564_v0  ;;  %v3076_v28 = vpop.f32.mrf.mxu1 }
 0x132   :  { %3485 = vmatpush3.msra.mxu1 %v4567_v50  ;;  %3460 = vmatmul.mubr.f32.vlgmr.msra.gmra.mxu0 %v4586_v62  ;;  %v2140_v50 = vand.u32 4294901760, %v4877_v49 }
 0x133   :  { %3486 = vmatprep.subr.mxu1 %v3564_v0  ;;  %3494 = vmatprep.mubr.msk.f32.mxu1 %vm3565_vm0, %v3564_v0 }
 0x134   :  { %3487 = vmatpush3.msra.mxu1 %v4590_v38  ;;  %3497 = vmatprep.subr.mxu0 %v3564_v0  ;;  %v2141_v57 = vsub.f32 %v4877_v49, %v2140_v50 }
 0x135   :  { %3488 = vmatprep.subr.mxu1 %v3564_v0  ;;  %3503 = vmatprep.mubr.msk.f32.mxu0 %vm3565_vm0, %v3564_v0 }
 0x136   :  { %3489 = vmatpush3.msra.mxu1 %v4605_v20  ;;  %3498 = vmatpush3.msra.mxu0 %v4860_v41  ;;  %v2142_v38 = vand.u32 4294901760, %v2141_v57  ;;  %v3566_v57 = vmov 2  }
 0x137   :  { %3490 = vmatprep.subr.mxu1 %v3564_v0  ;;  %3499 = vmatprep.subr.mxu0 %v3564_v0 }
 0x138   :  { %3491 = vmatpush3.msra.mxu1 %v4623_v56  ;;  %3500 = vmatpush3.msra.mxu0 %v4868_v46 }
 0x139   :  { %3492 = vmatprep.subr.mxu1 %v3564_v0  ;;  %3501 = vmatprep.subr.mxu0 %v3564_v0 }
 0x13a   :  { %3493 = vmatpush3.msra.mxu1 %v4635_v18  ;;  %3502 = vmatpush3.msra.mxu0 %v4879_v52 }
 0x13b   :  { %3495 = vmatmul.mubr.f32.vlgmr.msra.gmra.mxu1 %v4586_v62  ;;  %3506 = vmatprep.subr.mxu1 %v3564_v0  ;;  %v2147_v62 = vand.u32 4294901760, %v4888_v51 }
 0x13c   :  { %3512 = vmatprep.mubr.msk.f32.mxu1 %vm3565_vm0, %v3564_v0  ;;  %3515 = vmatprep.subr.mxu0 %v3564_v0 }
 0x13d   :  { %3507 = vmatpush3.msra.mxu1 %v2135_v27  ;;  %v2148_v1 = vsub.f32 %v4888_v51, %v2147_v62  ;;  %3558 = vset.pattern.permute.xlu0 %v3566_v57 }
 0x13e   :  { %3508 = vmatprep.subr.mxu1 %v3564_v0 }
 0x13f   :  { %3509 = vmatpush3.msra.mxu1 %v2142_v38  ;;  %v2149_v10 = vand.u32 4294901760, %v2148_v1 }
 0x140   :  { %3510 = vmatprep.subr.mxu1 %v3564_v0 }
 0x141   :  { %3511 = vmatpush3.msra.mxu1 %v2149_v10 }
 0x142   :  { %3524 = vmatprep.subr.mxu1 %v3564_v0 }
 0x148   :  { %v788_v29 = vpop.f32.mrf.mxu0 }
 0x149   :  { %v789_v40 = vadd.f32 %v788_v29, %v698_v25 }
 0x14a   :  { %v3111_v43 = vpop.f32.mrf.mxu0 }
 0x151   :  { %v939_v47 = vpop.f32.mrf.mxu1 }
 0x152   :  { %v940_v53 = vadd.f32 %v939_v47, %v789_v40 }
 0x153   :  { %v3146_v55 = vpop.f32.mrf.mxu1 }
 0x16a   :  { %v1043_v61 = vpop.f32.mrf.mxu0 }
 0x16b   :  { %v1044_v31 = vadd.f32 %v1043_v61, %v940_v53  ;;  %v2536_v53 = vld [vmem:[%s4965_s6] ss:$0 sm:$0xff] }
 0x16c   :  { %v3181_v32 = vpop.f32.mrf.mxu0 }
 0x173   :  { %v1132_v37 = vpop.f32.mrf.mxu1 }
 0x174   :  { %v1133_v44 = vadd.f32 %v1132_v37, %v1044_v31 }
 0x175   :  { %v3216_v60 = vpop.f32.mrf.mxu1 }
 0x18c   :  { %v1251_v20 = vpop.f32.mrf.mxu0 }
 0x18d   :  { %v1252_v48 = vadd.f32 %v1251_v20, %v1133_v44  ;;  %v3568_v20 = vmov 1  }
 0x18e   :  { %v3251_v19 = vpop.f32.mrf.mxu0 }
 0x195   :  { %v1338_v42 = vpop.f32.mrf.mxu1 }
 0x196   :  { %v1339_v56 = vadd.f32 %v1338_v42, %v1252_v48  ;;  %v2524_v48 = vld [vmem:[%s4962_s2] sm:$0x3] }
 0x197   :  { %v3286_v4 = vpop.f32.mrf.mxu1 }
 0x198   :  { %v3563_v4 = vld [vmem:[%s4961_s0] sm:$0x3] }
 0x1af   :  { %v1446_v12 = vpop.f32.mrf.mxu0 }
 0x1b1   :  { %v3321_v18 = vpop.f32.mrf.mxu0 }
 0x1b2   :  { %v2517_v18 = vld [vmem:[%s4960_s1] sm:$0x3] }
 0x1b7   :  { %v1597_v7 = vpop.f32.mrf.mxu1 }
 0x1b8   :  { %v1598_v5 = vadd.f32 %v1597_v7, %v1446_v12 }
 0x1b9   :  { %v3356_v13 = vpop.f32.mrf.mxu1 }
 0x1d0   :  { %v1701_v58 = vpop.f32.mrf.mxu0 }
 0x1d1   :  { %v1702_v54 = vadd.f32 %v1701_v58, %v1598_v5 }
 0x1d2   :  { %v3391_v21 = vpop.f32.mrf.mxu0 }
 0x1d9   :  { %v1790_v35 = vpop.f32.mrf.mxu1 }
 0x1da   :  { %v1791_v6 = vadd.f32 %v1790_v35, %v1702_v54 }
 0x1db   :  { %v3426_v24 = vpop.f32.mrf.mxu1 }
 0x1f2   :  { %v1909_v14 = vpop.f32.mrf.mxu0 }
 0x1f3   :  { %v1910_v9 = vadd.f32 %v1909_v14, %v1791_v6 }
 0x1f4   :  { %v3461_v59 = vpop.f32.mrf.mxu0 }
 0x1fb   :  { %v1996_v16 = vpop.f32.mrf.mxu1 }
 0x1fc   :  { %v1997_v34 = vadd.f32 %v1996_v16, %v1910_v9 }
 0x1fd   :  { %v3496_v36 = vpop.f32.mrf.mxu1 }
 0x1fe   :  { %v2000_v30 = vadd.f32 %v1997_v34, %v1339_v56 }
 0x200   :  { %v2008_v8 = vadd.f32 %v2535_v3, %v2000_v30 }
 0x202   :  { %vm2009_vm1 = vcmp.gt.f32.partialorder %v2008_v8, 0.0  ;;  %v2010_v39 = vmul.f32 0.1, %v2008_v8 }
 0x204   :  { %v2011_v15 = vsel %vm2009_vm1, %v2008_v8, %v2010_v39 }
 0x205   :  { %v2024_v17 = vsel %vm2022_vm2, %v2011_v15, 0 }
 0x206   :  { %v2094_v22 = vand.u32 4294901760, %v2024_v17 }
 0x208   :  { %v2095_v23 = vsub.f32 %v2024_v17, %v2094_v22  ;;  %3513 = vmatmul.mubr.f32.vlgmr.msra.gmra.mxu1 %v2094_v22 }
 0x209   :  { %3525 = vmatpush3.msra.mxu1 %v4860_v41  ;;  %3530 = vmatprep.mubr.msk.f32.mxu1 %vm3565_vm0, %v3564_v0 }
 0x20a   :  { %3526 = vmatprep.subr.mxu1 %v3564_v0  ;;  %v2096_v25 = vand.u32 4294901760, %v2095_v23 }
 0x20b   :  { %3527 = vmatpush3.msra.mxu1 %v4868_v46 }
 0x20c   :  { %3528 = vmatprep.subr.mxu1 %v3564_v0  ;;  %v2097_v28 = vsub.f32 %v2095_v23, %v2096_v25 }
 0x20d   :  { %3529 = vmatpush3.msra.mxu1 %v4879_v52 }
 0x20e   :  { %3531 = vmatmul.mubr.f32.vlgmr.msra.gmra.mxu1 %v2096_v25  ;;  %3542 = vmatprep.subr.mxu1 %v3564_v0  ;;  %v2098_v29 = vand.u32 4294901760, %v2097_v28 }
 0x20f   :  { %3543 = vmatpush3.msra.mxu1 %v4860_v41  ;;  %3548 = vmatprep.mubr.msk.f32.mxu1 %vm3565_vm0, %v3564_v0 }
 0x210   :  { %3544 = vmatprep.subr.mxu1 %v3564_v0  ;;  %3504 = vmatmul.mubr.f32.vlgmr.msra.gmra.mxu0 %v2098_v29 }
 0x211   :  { %3516 = vmatpush3.msra.mxu0 %v4866_v45  ;;  %3545 = vmatpush3.msra.mxu1 %v4868_v46 }
 0x212   :  { %3517 = vmatprep.subr.mxu0 %v3564_v0  ;;  %3546 = vmatprep.subr.mxu1 %v3564_v0 }
 0x213   :  { %3518 = vmatpush3.msra.mxu0 %v4877_v49  ;;  %3547 = vmatpush3.msra.mxu1 %v4879_v52 }
 0x214   :  { %3519 = vmatprep.subr.mxu0 %v3564_v0  ;;  %3549 = vmatmul.mubr.f32.vlgmr.msra.gmra.mxu1 %v2094_v22 }
 0x215   :  { %3520 = vmatpush3.msra.mxu0 %v4888_v51  ;;  %3521 = vmatprep.mubr.msk.f32.mxu0 %vm3565_vm0, %v3564_v0 }
 0x216   :  { %3522 = vmatmul.mubr.f32.vlgmr.msra.gmra.mxu0 %v2095_v23  ;;  %3533 = vmatprep.subr.mxu0 %v3564_v0 }
 0x217   :  { %3534 = vmatpush3.msra.mxu0 %v2133_v26  ;;  %3539 = vmatprep.mubr.msk.f32.mxu0 %vm3565_vm0, %v3564_v0 }
 0x218   :  { %3535 = vmatprep.subr.mxu0 %v3564_v0 }
 0x219   :  { %3536 = vmatpush3.msra.mxu0 %v2140_v50 }
 0x21a   :  { %3537 = vmatprep.subr.mxu0 %v3564_v0 }
 0x21b   :  { %3538 = vmatpush3.msra.mxu0 %v2147_v62  ;;  %v3567_v62 = vmov 0  }
 0x21c   :  { %3540 = vmatmul.mubr.f32.vlgmr.msra.gmra.mxu0 %v2094_v22  ;;  %3556 = vset.pattern.permute.xlu1 %v3567_v62 }
 0x2c8   :  { %v2186_v40 = vpop.f32.mrf.mxu1 }
 0x2ca   :  { %v3514_v43 = vpop.f32.mrf.mxu1 }
 0x2ce   :  { %v2340_v47 = vpop.f32.mrf.mxu1 }
 0x2d0   :  { %v3532_v55 = vpop.f32.mrf.mxu1  ;;  %v2100_v61 = vpop.f32.mrf.mxu0 }
 0x2d1   :  { %v2101_v31 = vadd.f32 %v2536_v53, %v2100_v61 }
 0x2d2   :  { %v3505_v32 = vpop.f32.mrf.mxu0 }
 0x2d3   :  { %v2187_v37 = vadd.f32 %v2186_v40, %v2101_v31 }
 0x2d4   :  { %v2494_v44 = vpop.f32.mrf.mxu1 }
 0x2d6   :  { %v2264_v60 = vpop.f32.mrf.mxu0  ;;  %v3550_v2 = vpop.f32.mrf.mxu1 }
 0x2d7   :  { %v2265_v0 = vadd.f32 %v2264_v60, %v2187_v37 }
 0x2d8   :  { %v3523_v41 = vpop.f32.mrf.mxu0 }
 0x2d9   :  { %v2341_v11 = vadd.f32 %v2340_v47, %v2265_v0 }
 0x2dc   :  { %v2420_v45 = vpop.f32.mrf.mxu0 }
 0x2dd   :  { %v2421_v46 = vadd.f32 %v2420_v45, %v2341_v11 }
 0x2de   :  { %v3541_v63 = vpop.f32.mrf.mxu0 }
 0x2df   :  { %v2495_v26 = vadd.f32 %v2494_v44, %v2421_v46 }
 0x2e1   :  { %v2499_v49 = vsel %vm2498_vm3, %v2495_v26, -inf }
 0x2e2   :  { %2500 = vmax.xlane.f32.xlu0 %v2499_v49 }
 0x36b   :  { %v2501_v52 = vpop.xlane.xlu0 %2500 }
 0x36c   :  { %v2502_v33 = vsub.f32 %v2495_v26, %v2501_v52 }
 0x36e   :  { %v2503_v50 = vmul.f32 1.442695, %v2502_v33 }
 0x370   :  { %3559 = vpow2.f32 %v2503_v50 }
 0x37d   :  { %v3560_v51 = vpop.eup %3559 }
 0x37e   :  { %v2505_v27 = vsel %vm2498_vm3, %v3560_v51, 0.0 }
 0x37f   :  { %2506 = vadd.xlane.f32.xlu0 %v2505_v27 }
 0x408   :  { %v2507_v38 = vpop.xlane.xlu0 %2506 }
 0x409   :  { %3561 = vrcp.f32 %v2507_v38 }
 0x416   :  { %v3562_v1 = vpop.eup %3561 }
 0x417   :  { %v2509_v10 = vmul.f32 %v3562_v1, %v3560_v51 }
 0x419   :  { %2526 = vperm.xlu0 %3558, %v2509_v10   ;;  %2512 = vperm.xlu1 %3556, %v2509_v10  }
 0x41d   :  { %3557 = vset.pattern.permute.xlu1 %v3568_v20 }
 0x41e   :  { %2519 = vperm.xlu1 %3557, %v2509_v10  }
 0x494   :  { %v2527_v19 = vpop.permute.xlu0 %2526  ;;  %v2513_v42 = vpop.permute.xlu1 %2512 }
 0x495   :  { %v2529_v56 = vmul.f32 %v2527_v19, %v2524_v48  ;;  %v2515_v12 = vmul.f32 %v3563_v4, %v2513_v42 }
 0x497   :  { %2530 = vst [vmem:[%s4966_s7 + $0x4] sm:$0x3] %v2529_v56  ;;  %2516 = vst [vmem:[%s4966_s7] sm:$0x3] %v2515_v12 }
 0x499   :  { %v2520_v7 = vpop.permute.xlu1 %2519 }
 0x49a   :  { %v2522_v13 = vmul.f32 %v2520_v7, %v2517_v18 }
 0x49c   :  { %2523 = vst [vmem:[%s4966_s7 + $0x2] sm:$0x3] %v2522_v13 }

</bundles_post_ra>
